<compile_context>
chip_gen: v7x
topology: tpu7x:2x2x1
jax: 0.10.0
libtpu: 0.0.40
codegen_flags: <defaults>
</compile_context>

<pallas_src>
import numpy as np

import jax
import jax.numpy as jnp
from jax.experimental import pallas as pl
from jax.experimental.pallas import tpu as pltpu


def _round_up(x, m):
    return (x + m - 1) // m * m


def _make_kernel(*, cin, k, k_pad, ho, wo, h_use, compute_dtype):
    m_img = ho * wo

    def kernel(w_ref, b_ref, x_ref, o_ref, p_ref):
        # w_ref: (Cout_p, K_pad)            bf16, resident across grid steps
        # b_ref: (Cout_p, 1)                f32,  resident
        # x_ref: (1, 2*H_use, Cin, Wh)      bf16, one image (even/odd col phases)
        # o_ref: (1, Cout_p, Ho*Wo)         f32,  lane-dense output tile
        # p_ref: (K_pad, Ho*Wo)             bf16, VMEM scratch patch matrix
        if k_pad > k:
            # Zero the K padding rows every step (cheap) so uninitialized VMEM
            # can never contribute NaN*0; done unconditionally so it is also
            # correct when the "parallel" grid axis is split across cores.
            p_ref[k:k_pad, :] = jnp.zeros((k_pad - k, m_img), compute_dtype)

        # In-kernel 3x3 / stride-2 gather.  All offsets are static (python-
        # unrolled); every source is a contiguous (Cin, Wo) tile of an
        # even/odd column-phase plane -> no lane-strided accesses anywhere.
        for ho_i in range(ho):
            for kh in range(3):
                for kw in range(3):
                    ph = kw % 2        # 0: even columns, 1: odd columns
                    cs = kw // 2       # column offset inside that phase
                    row = ph * h_use + 2 * ho_i + kh
                    tap = kh * 3 + kw
                    p_ref[tap * cin:(tap + 1) * cin,
                          ho_i * wo:(ho_i + 1) * wo] = x_ref[0, row, :, cs:cs + wo]

        # One lane-dense MXU GEMM per image, f32 accumulate, bias + ReLU.
        acc = jnp.dot(w_ref[...], p_ref[...], preferred_element_type=jnp.float32)
        acc = acc + b_ref[...]
        o_ref[0] = jnp.maximum(acc, 0.0).astype(o_ref.dtype)

    return kernel


def ladder_fconv_block_forward(x_nchw, w_oihw, bias, *, compute_dtype=jnp.bfloat16):
    """LadderFConvBlock.forward (eval / corrupt=False): ReLU(Conv2d(k3,s2)(x)+b).

    x_nchw: (N, Cin, H, W) float32
    w_oihw: (Cout, Cin, 3, 3) float32 (PyTorch Conv2d weight layout)
    bias:   (Cout,) float32
    returns (N, Cout, Ho, Wo) float32 with Ho = (H-3)//2 + 1, Wo = (W-3)//2 + 1
    """
    N, Cin, H, W = x_nchw.shape
    Cout = w_oihw.shape[0]
    KH = KW = 3
    S = 2
    Ho = (H - KH) // S + 1
    Wo = (W - KW) // S + 1
    assert Ho > 0 and Wo > 0, "input spatial dims too small for k=3, s=2 conv"
    M_img = Ho * Wo
    K = KH * KW * Cin

    Cout_p = _round_up(Cout, 8)       # f32 output sublane alignment
    K_pad = _round_up(K, 16)          # bf16 operand sublane alignment
    H_use = 2 * Ho + 1                # input rows actually touched by the conv
    Wh = Wo + 1                       # even phase needs Wo+1 cols, odd needs Wo

    # ---- single fused wrapper pass over x: even/odd column split + layout ----
    # ---- change + bf16 cast.  No HBM im2col, no patch-matrix jnp.pad.     ----
    xe = x_nchw[:, :, :H_use, 0:2 * Wo + 1:2]                    # (N,Cin,H_use,Wo+1)
    xo = x_nchw[:, :, :H_use, 1:2 * Wo:2]                        # (N,Cin,H_use,Wo)
    xo = jnp.pad(xo, ((0, 0), (0, 0), (0, 0), (0, 1)))           # -> (...,Wo+1)
    x_eo = jnp.concatenate([xe, xo], axis=2)                     # (N,Cin,2*H_use,Wh)
    x_eo = jnp.transpose(x_eo, (0, 2, 1, 3)).astype(compute_dtype)  # (N,2*H_use,Cin,Wh)

    # (Cout,Cin,3,3) -> (Cout,kh,kw,Cin) -> (Cout,K): column index = tap*Cin+ci.
    w2d = jnp.transpose(w_oihw, (0, 2, 3, 1)).reshape(Cout, K)
    w2d = jnp.pad(w2d, ((0, Cout_p - Cout), (0, K_pad - K))).astype(compute_dtype)
    b2d = jnp.pad(bias.reshape(Cout, 1),
                  ((0, Cout_p - Cout), (0, 0))).astype(jnp.float32)

    # ---- generation-aware VMEM budget + cost estimate ----
    cbytes = np.dtype(compute_dtype).itemsize
    est = (2 * (2 * H_use) * Cin * Wh * cbytes     # image block, double-buffered
           + 2 * Cout_p * K_pad * cbytes           # resident weight (2 buffers)
           + 2 * Cout_p * 4                        # resident bias
           + 2 * Cout_p * M_img * 4                # output block, double-buffered
           + K_pad * M_img * cbytes)               # patch scratch
    try:
        vmem_cap = int(pltpu.get_tpu_info().vmem_capacity_bytes)
    except Exception:
        vmem_cap = 64 << 20                        # safe floor for all generations
    vmem_limit = int(min(vmem_cap, max(32 << 20, 2 * est + (4 << 20))))

    cost = pl.CostEstimate(
        flops=2 * N * M_img * K * Cout,
        transcendentals=0,
        bytes_accessed=int(x_eo.size * cbytes + w2d.size * cbytes + b2d.size * 4
                           + N * Cout_p * M_img * 4),
    )

    kernel = _make_kernel(cin=Cin, k=K, k_pad=K_pad, ho=Ho, wo=Wo,
                          h_use=H_use, compute_dtype=compute_dtype)

    out = pl.pallas_call(
        kernel,
        out_shape=jax.ShapeDtypeStruct((N, Cout_p, M_img), jnp.float32),
        grid=(N,),
        in_specs=[
            pl.BlockSpec((Cout_p, K_pad), lambda n: (0, 0)),              # weight
            pl.BlockSpec((Cout_p, 1), lambda n: (0, 0)),                  # bias
            pl.BlockSpec((1, 2 * H_use, Cin, Wh), lambda n: (n, 0, 0, 0)),  # image
        ],
        out_specs=pl.BlockSpec((1, Cout_p, M_img), lambda n: (n, 0, 0)),
        scratch_shapes=[pltpu.VMEM((K_pad, M_img), compute_dtype)],
        compiler_params=pltpu.CompilerParams(
            dimension_semantics=("parallel",),   # one image per step, independent
            vmem_limit_bytes=vmem_limit,
        ),
        cost_estimate=cost,
    )(w2d, b2d, x_eo)

    if Cout_p != Cout:
        out = out[:, :Cout, :]
    # (N, Cout, Ho*Wo) is already NCHW-ordered -> free reshape, no transpose.
    return out.reshape(N, Cout, Ho, Wo).astype(x_nchw.dtype)


if __name__ == "__main__":
    key = jax.random.PRNGKey(0)
    k_x, k_w, k_b = jax.random.split(key, 3)

    # small shapes consistent with the module
    N, Cin, H, W = 2, 4, 16, 16
    Cout = 8

    x = jax.random.normal(k_x, (N, Cin, H, W), dtype=jnp.float32)

    # deterministic parameter init (mimics PyTorch uniform(-1/sqrt(fan_in), +))
    fan_in = Cin * 3 * 3
    bound = 1.0 / float(fan_in) ** 0.5
    w = jax.random.uniform(k_w, (Cout, Cin, 3, 3), jnp.float32, -bound, bound)
    b = jax.random.uniform(k_b, (Cout,), jnp.float32, -bound, bound)

    fwd = jax.jit(ladder_fconv_block_forward)
    out = jax.block_until_ready(fwd(x, w, b))

    # reference: nn.Conv2d(k=3, s=2, p=0) + bias + ReLU semantics in f32
    ref = jax.lax.conv_general_dilated(
        x, w, window_strides=(2, 2), padding="VALID",
        dimension_numbers=("NCHW", "OIHW", "NCHW"))
    ref = jnp.maximum(ref + b[None, :, None, None], 0.0)

    assert out.shape == (N, Cout, 7, 7), out.shape
    # bf16 MXU operands with f32 accumulation -> relaxed tolerance vs f32 ref
    assert jnp.allclose(out, ref, atol=3e-2, rtol=3e-2), \
        float(jnp.max(jnp.abs(out - ref)))

    print("KERNEL_OK")
</pallas_src>

<mosaic_0001>
module attributes {stable_mosaic.version = 11 : i64} {
  func.func @kernel(%arg0: i32, %arg1: memref<8x48xbf16, #tpu.memory_space<vmem>>, %arg2: memref<8x1xf32, #tpu.memory_space<vmem>>, %arg3: memref<1x30x4x8xbf16, #tpu.memory_space<vmem>>, %arg4: memref<1x8x49xf32, #tpu.memory_space<vmem>>, %arg5: memref<48x49xbf16, #tpu.memory_space<vmem>>) attributes {dimension_semantics = [#tpu.dimension_semantics<parallel>], iteration_bounds = array<i64: 2>, scalar_prefetch = 0 : i64, scratch_operands = 1 : i64, tpu.core_type = #tpu.core_type<tc>, window_params = [{pipeline_mode = #tpu.pipeline_mode<synchronous>, transform_indices = @transform_0, window_bounds = array<i64: 8, 48>}, {pipeline_mode = #tpu.pipeline_mode<synchronous>, transform_indices = @transform_1, window_bounds = array<i64: 8, 1>}, {transform_indices = @transform_2, window_bounds = array<i64: 1, 30, 4, 8>}, {transform_indices = @transform_3, window_bounds = array<i64: 1, 8, 49>}]} {
    %cst = arith.constant 0.000000e+00 : bf16
    %0 = vector.broadcast %cst : bf16 to vector<12x49xbf16>
    %c36 = arith.constant 36 : index
    %c0 = arith.constant 0 : index
    %1 = vector.load %arg5[%c36, %c0] : memref<48x49xbf16, #tpu.memory_space<vmem>>, vector<12x49xbf16>
    tpu.vector_store %arg5[%c36, %c0], %0 {strides = array<i32>} : memref<48x49xbf16, #tpu.memory_space<vmem>>, vector<12x49xbf16>,
    %c0_0 = arith.constant 0 : index
    %c0_1 = arith.constant 0 : index
    %c0_2 = arith.constant 0 : index
    %c0_3 = arith.constant 0 : index
    %2 = vector.load %arg3[%c0_0, %c0_1, %c0_2, %c0_3] : memref<1x30x4x8xbf16, #tpu.memory_space<vmem>>, vector<1x1x4x7xbf16>
    %3 = vector.shape_cast %2 : vector<1x1x4x7xbf16> to vector<4x7xbf16>
    %c0_4 = arith.constant 0 : index
    %c0_5 = arith.constant 0 : index
    %4 = vector.load %arg5[%c0_4, %c0_5] : memref<48x49xbf16, #tpu.memory_space<vmem>>, vector<4x7xbf16>
    tpu.vector_store %arg5[%c0_4, %c0_5], %3 {strides = array<i32>} : memref<48x49xbf16, #tpu.memory_space<vmem>>, vector<4x7xbf16>,
    %c0_6 = arith.constant 0 : index
    %c15 = arith.constant 15 : index
    %c0_7 = arith.constant 0 : index
    %c0_8 = arith.constant 0 : index
    %5 = vector.load %arg3[%c0_6, %c15, %c0_7, %c0_8] : memref<1x30x4x8xbf16, #tpu.memory_space<vmem>>, vector<1x1x4x7xbf16>
    %6 = vector.shape_cast %5 : vector<1x1x4x7xbf16> to vector<4x7xbf16>
    %c4 = arith.constant 4 : index
    %c0_9 = arith.constant 0 : index
    %7 = vector.load %arg5[%c4, %c0_9] : memref<48x49xbf16, #tpu.memory_space<vmem>>, vector<4x7xbf16>
    tpu.vector_store %arg5[%c4, %c0_9], %6 {strides = array<i32>} : memref<48x49xbf16, #tpu.memory_space<vmem>>, vector<4x7xbf16>,
    %c0_10 = arith.constant 0 : index
    %c0_11 = arith.constant 0 : index
    %c0_12 = arith.constant 0 : index
    %c1 = arith.constant 1 : index
    %8 = vector.load %arg3[%c0_10, %c0_11, %c0_12, %c1] : memref<1x30x4x8xbf16, #tpu.memory_space<vmem>>, vector<1x1x4x7xbf16>
    %9 = vector.shape_cast %8 : vector<1x1x4x7xbf16> to vector<4x7xbf16>
    %c8 = arith.constant 8 : index
    %c0_13 = arith.constant 0 : index
    %10 = vector.load %arg5[%c8, %c0_13] : memref<48x49xbf16, #tpu.memory_space<vmem>>, vector<4x7xbf16>
    tpu.vector_store %arg5[%c8, %c0_13], %9 {strides = array<i32>} : memref<48x49xbf16, #tpu.memory_space<vmem>>, vector<4x7xbf16>,
    %c0_14 = arith.constant 0 : index
    %c1_15 = arith.constant 1 : index
    %c0_16 = arith.constant 0 : index
    %c0_17 = arith.constant 0 : index
    %11 = vector.load %arg3[%c0_14, %c1_15, %c0_16, %c0_17] : memref<1x30x4x8xbf16, #tpu.memory_space<vmem>>, vector<1x1x4x7xbf16>
    %12 = vector.shape_cast %11 : vector<1x1x4x7xbf16> to vector<4x7xbf16>
    %c12 = arith.constant 12 : index
    %c0_18 = arith.constant 0 : index
    %13 = vector.load %arg5[%c12, %c0_18] : memref<48x49xbf16, #tpu.memory_space<vmem>>, vector<4x7xbf16>
    tpu.vector_store %arg5[%c12, %c0_18], %12 {strides = array<i32>} : memref<48x49xbf16, #tpu.memory_space<vmem>>, vector<4x7xbf16>,
    %c0_19 = arith.constant 0 : index
    %c16 = arith.constant 16 : index
    %c0_20 = arith.constant 0 : index
    %c0_21 = arith.constant 0 : index
    %14 = vector.load %arg3[%c0_19, %c16, %c0_20, %c0_21] : memref<1x30x4x8xbf16, #tpu.memory_space<vmem>>, vector<1x1x4x7xbf16>
    %15 = vector.shape_cast %14 : vector<1x1x4x7xbf16> to vector<4x7xbf16>
    %c16_22 = arith.constant 16 : index
    %c0_23 = arith.constant 0 : index
    %16 = vector.load %arg5[%c16_22, %c0_23] : memref<48x49xbf16, #tpu.memory_space<vmem>>, vector<4x7xbf16>
    tpu.vector_store %arg5[%c16_22, %c0_23], %15 {strides = array<i32>} : memref<48x49xbf16, #tpu.memory_space<vmem>>, vector<4x7xbf16>,
    %c0_24 = arith.constant 0 : index
    %c1_25 = arith.constant 1 : index
    %c0_26 = arith.constant 0 : index
    %c1_27 = arith.constant 1 : index
    %17 = vector.load %arg3[%c0_24, %c1_25, %c0_26, %c1_27] : memref<1x30x4x8xbf16, #tpu.memory_space<vmem>>, vector<1x1x4x7xbf16>
    %18 = vector.shape_cast %17 : vector<1x1x4x7xbf16> to vector<4x7xbf16>
    %c20 = arith.constant 20 : index
    %c0_28 = arith.constant 0 : index
    %19 = vector.load %arg5[%c20, %c0_28] : memref<48x49xbf16, #tpu.memory_space<vmem>>, vector<4x7xbf16>
    tpu.vector_store %arg5[%c20, %c0_28], %18 {strides = array<i32>} : memref<48x49xbf16, #tpu.memory_space<vmem>>, vector<4x7xbf16>,
    %c0_29 = arith.constant 0 : index
    %c2 = arith.constant 2 : index
    %c0_30 = arith.constant 0 : index
    %c0_31 = arith.constant 0 : index
    %20 = vector.load %arg3[%c0_29, %c2, %c0_30, %c0_31] : memref<1x30x4x8xbf16, #tpu.memory_space<vmem>>, vector<1x1x4x7xbf16>
    %21 = vector.shape_cast %20 : vector<1x1x4x7xbf16> to vector<4x7xbf16>
    %c24 = arith.constant 24 : index
    %c0_32 = arith.constant 0 : index
    %22 = vector.load %arg5[%c24, %c0_32] : memref<48x49xbf16, #tpu.memory_space<vmem>>, vector<4x7xbf16>
    tpu.vector_store %arg5[%c24, %c0_32], %21 {strides = array<i32>} : memref<48x49xbf16, #tpu.memory_space<vmem>>, vector<4x7xbf16>,
    %c0_33 = arith.constant 0 : index
    %c17 = arith.constant 17 : index
    %c0_34 = arith.constant 0 : index
    %c0_35 = arith.constant 0 : index
    %23 = vector.load %arg3[%c0_33, %c17, %c0_34, %c0_35] : memref<1x30x4x8xbf16, #tpu.memory_space<vmem>>, vector<1x1x4x7xbf16>
    %24 = vector.shape_cast %23 : vector<1x1x4x7xbf16> to vector<4x7xbf16>
    %c28 = arith.constant 28 : index
    %c0_36 = arith.constant 0 : index
    %25 = vector.load %arg5[%c28, %c0_36] : memref<48x49xbf16, #tpu.memory_space<vmem>>, vector<4x7xbf16>
    tpu.vector_store %arg5[%c28, %c0_36], %24 {strides = array<i32>} : memref<48x49xbf16, #tpu.memory_space<vmem>>, vector<4x7xbf16>,
    %c0_37 = arith.constant 0 : index
    %c2_38 = arith.constant 2 : index
    %c0_39 = arith.constant 0 : index
    %c1_40 = arith.constant 1 : index
    %26 = vector.load %arg3[%c0_37, %c2_38, %c0_39, %c1_40] : memref<1x30x4x8xbf16, #tpu.memory_space<vmem>>, vector<1x1x4x7xbf16>
    %27 = vector.shape_cast %26 : vector<1x1x4x7xbf16> to vector<4x7xbf16>
    %c32 = arith.constant 32 : index
    %c0_41 = arith.constant 0 : index
    %28 = vector.load %arg5[%c32, %c0_41] : memref<48x49xbf16, #tpu.memory_space<vmem>>, vector<4x7xbf16>
    tpu.vector_store %arg5[%c32, %c0_41], %27 {strides = array<i32>} : memref<48x49xbf16, #tpu.memory_space<vmem>>, vector<4x7xbf16>,
    %c0_42 = arith.constant 0 : index
    %c2_43 = arith.constant 2 : index
    %c0_44 = arith.constant 0 : index
    %c0_45 = arith.constant 0 : index
    %29 = vector.load %arg3[%c0_42, %c2_43, %c0_44, %c0_45] : memref<1x30x4x8xbf16, #tpu.memory_space<vmem>>, vector<1x1x4x7xbf16>
    %30 = vector.shape_cast %29 : vector<1x1x4x7xbf16> to vector<4x7xbf16>
    %c0_46 = arith.constant 0 : index
    %c7 = arith.constant 7 : index
    %31 = vector.load %arg5[%c0_46, %c7] : memref<48x49xbf16, #tpu.memory_space<vmem>>, vector<4x7xbf16>
    tpu.vector_store %arg5[%c0_46, %c7], %30 {strides = array<i32>} : memref<48x49xbf16, #tpu.memory_space<vmem>>, vector<4x7xbf16>,
    %c0_47 = arith.constant 0 : index
    %c17_48 = arith.constant 17 : index
    %c0_49 = arith.constant 0 : index
    %c0_50 = arith.constant 0 : index
    %32 = vector.load %arg3[%c0_47, %c17_48, %c0_49, %c0_50] : memref<1x30x4x8xbf16, #tpu.memory_space<vmem>>, vector<1x1x4x7xbf16>
    %33 = vector.shape_cast %32 : vector<1x1x4x7xbf16> to vector<4x7xbf16>
    %c4_51 = arith.constant 4 : index
    %c7_52 = arith.constant 7 : index
    %34 = vector.load %arg5[%c4_51, %c7_52] : memref<48x49xbf16, #tpu.memory_space<vmem>>, vector<4x7xbf16>
    tpu.vector_store %arg5[%c4_51, %c7_52], %33 {strides = array<i32>} : memref<48x49xbf16, #tpu.memory_space<vmem>>, vector<4x7xbf16>,
    %c0_53 = arith.constant 0 : index
    %c2_54 = arith.constant 2 : index
    %c0_55 = arith.constant 0 : index
    %c1_56 = arith.constant 1 : index
    %35 = vector.load %arg3[%c0_53, %c2_54, %c0_55, %c1_56] : memref<1x30x4x8xbf16, #tpu.memory_space<vmem>>, vector<1x1x4x7xbf16>
    %36 = vector.shape_cast %35 : vector<1x1x4x7xbf16> to vector<4x7xbf16>
    %c8_57 = arith.constant 8 : index
    %c7_58 = arith.constant 7 : index
    %37 = vector.load %arg5[%c8_57, %c7_58] : memref<48x49xbf16, #tpu.memory_space<vmem>>, vector<4x7xbf16>
    tpu.vector_store %arg5[%c8_57, %c7_58], %36 {strides = array<i32>} : memref<48x49xbf16, #tpu.memory_space<vmem>>, vector<4x7xbf16>,
    %c0_59 = arith.constant 0 : index
    %c3 = arith.constant 3 : index
    %c0_60 = arith.constant 0 : index
    %c0_61 = arith.constant 0 : index
    %38 = vector.load %arg3[%c0_59, %c3, %c0_60, %c0_61] : memref<1x30x4x8xbf16, #tpu.memory_space<vmem>>, vector<1x1x4x7xbf16>
    %39 = vector.shape_cast %38 : vector<1x1x4x7xbf16> to vector<4x7xbf16>
    %c12_62 = arith.constant 12 : index
    %c7_63 = arith.constant 7 : index
    %40 = vector.load %arg5[%c12_62, %c7_63] : memref<48x49xbf16, #tpu.memory_space<vmem>>, vector<4x7xbf16>
    tpu.vector_store %arg5[%c12_62, %c7_63], %39 {strides = array<i32>} : memref<48x49xbf16, #tpu.memory_space<vmem>>, vector<4x7xbf16>,
    %c0_64 = arith.constant 0 : index
    %c18 = arith.constant 18 : index
    %c0_65 = arith.constant 0 : index
    %c0_66 = arith.constant 0 : index
    %41 = vector.load %arg3[%c0_64, %c18, %c0_65, %c0_66] : memref<1x30x4x8xbf16, #tpu.memory_space<vmem>>, vector<1x1x4x7xbf16>
    %42 = vector.shape_cast %41 : vector<1x1x4x7xbf16> to vector<4x7xbf16>
    %c16_67 = arith.constant 16 : index
    %c7_68 = arith.constant 7 : index
    %43 = vector.load %arg5[%c16_67, %c7_68] : memref<48x49xbf16, #tpu.memory_space<vmem>>, vector<4x7xbf16>
    tpu.vector_store %arg5[%c16_67, %c7_68], %42 {strides = array<i32>} : memref<48x49xbf16, #tpu.memory_space<vmem>>, vector<4x7xbf16>,
    %c0_69 = arith.constant 0 : index
    %c3_70 = arith.constant 3 : index
    %c0_71 = arith.constant 0 : index
    %c1_72 = arith.constant 1 : index
    %44 = vector.load %arg3[%c0_69, %c3_70, %c0_71, %c1_72] : memref<1x30x4x8xbf16, #tpu.memory_space<vmem>>, vector<1x1x4x7xbf16>
    %45 = vector.shape_cast %44 : vector<1x1x4x7xbf16> to vector<4x7xbf16>
    %c20_73 = arith.constant 20 : index
    %c7_74 = arith.constant 7 : index
    %46 = vector.load %arg5[%c20_73, %c7_74] : memref<48x49xbf16, #tpu.memory_space<vmem>>, vector<4x7xbf16>
    tpu.vector_store %arg5[%c20_73, %c7_74], %45 {strides = array<i32>} : memref<48x49xbf16, #tpu.memory_space<vmem>>, vector<4x7xbf16>,
    %c0_75 = arith.constant 0 : index
    %c4_76 = arith.constant 4 : index
    %c0_77 = arith.constant 0 : index
    %c0_78 = arith.constant 0 : index
    %47 = vector.load %arg3[%c0_75, %c4_76, %c0_77, %c0_78] : memref<1x30x4x8xbf16, #tpu.memory_space<vmem>>, vector<1x1x4x7xbf16>
    %48 = vector.shape_cast %47 : vector<1x1x4x7xbf16> to vector<4x7xbf16>
    %c24_79 = arith.constant 24 : index
    %c7_80 = arith.constant 7 : index
    %49 = vector.load %arg5[%c24_79, %c7_80] : memref<48x49xbf16, #tpu.memory_space<vmem>>, vector<4x7xbf16>
    tpu.vector_store %arg5[%c24_79, %c7_80], %48 {strides = array<i32>} : memref<48x49xbf16, #tpu.memory_space<vmem>>, vector<4x7xbf16>,
    %c0_81 = arith.constant 0 : index
    %c19 = arith.constant 19 : index
    %c0_82 = arith.constant 0 : index
    %c0_83 = arith.constant 0 : index
    %50 = vector.load %arg3[%c0_81, %c19, %c0_82, %c0_83] : memref<1x30x4x8xbf16, #tpu.memory_space<vmem>>, vector<1x1x4x7xbf16>
    %51 = vector.shape_cast %50 : vector<1x1x4x7xbf16> to vector<4x7xbf16>
    %c28_84 = arith.constant 28 : index
    %c7_85 = arith.constant 7 : index
    %52 = vector.load %arg5[%c28_84, %c7_85] : memref<48x49xbf16, #tpu.memory_space<vmem>>, vector<4x7xbf16>
    tpu.vector_store %arg5[%c28_84, %c7_85], %51 {strides = array<i32>} : memref<48x49xbf16, #tpu.memory_space<vmem>>, vector<4x7xbf16>,
    %c0_86 = arith.constant 0 : index
    %c4_87 = arith.constant 4 : index
    %c0_88 = arith.constant 0 : index
    %c1_89 = arith.constant 1 : index
    %53 = vector.load %arg3[%c0_86, %c4_87, %c0_88, %c1_89] : memref<1x30x4x8xbf16, #tpu.memory_space<vmem>>, vector<1x1x4x7xbf16>
    %54 = vector.shape_cast %53 : vector<1x1x4x7xbf16> to vector<4x7xbf16>
    %c32_90 = arith.constant 32 : index
    %c7_91 = arith.constant 7 : index
    %55 = vector.load %arg5[%c32_90, %c7_91] : memref<48x49xbf16, #tpu.memory_space<vmem>>, vector<4x7xbf16>
    tpu.vector_store %arg5[%c32_90, %c7_91], %54 {strides = array<i32>} : memref<48x49xbf16, #tpu.memory_space<vmem>>, vector<4x7xbf16>,
    %c0_92 = arith.constant 0 : index
    %c4_93 = arith.constant 4 : index
    %c0_94 = arith.constant 0 : index
    %c0_95 = arith.constant 0 : index
    %56 = vector.load %arg3[%c0_92, %c4_93, %c0_94, %c0_95] : memref<1x30x4x8xbf16, #tpu.memory_space<vmem>>, vector<1x1x4x7xbf16>
    %57 = vector.shape_cast %56 : vector<1x1x4x7xbf16> to vector<4x7xbf16>
    %c0_96 = arith.constant 0 : index
    %c14 = arith.constant 14 : index
    %58 = vector.load %arg5[%c0_96, %c14] : memref<48x49xbf16, #tpu.memory_space<vmem>>, vector<4x7xbf16>
    tpu.vector_store %arg5[%c0_96, %c14], %57 {strides = array<i32>} : memref<48x49xbf16, #tpu.memory_space<vmem>>, vector<4x7xbf16>,
    %c0_97 = arith.constant 0 : index
    %c19_98 = arith.constant 19 : index
    %c0_99 = arith.constant 0 : index
    %c0_100 = arith.constant 0 : index
    %59 = vector.load %arg3[%c0_97, %c19_98, %c0_99, %c0_100] : memref<1x30x4x8xbf16, #tpu.memory_space<vmem>>, vector<1x1x4x7xbf16>
    %60 = vector.shape_cast %59 : vector<1x1x4x7xbf16> to vector<4x7xbf16>
    %c4_101 = arith.constant 4 : index
    %c14_102 = arith.constant 14 : index
    %61 = vector.load %arg5[%c4_101, %c14_102] : memref<48x49xbf16, #tpu.memory_space<vmem>>, vector<4x7xbf16>
    tpu.vector_store %arg5[%c4_101, %c14_102], %60 {strides = array<i32>} : memref<48x49xbf16, #tpu.memory_space<vmem>>, vector<4x7xbf16>,
    %c0_103 = arith.constant 0 : index
    %c4_104 = arith.constant 4 : index
    %c0_105 = arith.constant 0 : index
    %c1_106 = arith.constant 1 : index
    %62 = vector.load %arg3[%c0_103, %c4_104, %c0_105, %c1_106] : memref<1x30x4x8xbf16, #tpu.memory_space<vmem>>, vector<1x1x4x7xbf16>
    %63 = vector.shape_cast %62 : vector<1x1x4x7xbf16> to vector<4x7xbf16>
    %c8_107 = arith.constant 8 : index
    %c14_108 = arith.constant 14 : index
    %64 = vector.load %arg5[%c8_107, %c14_108] : memref<48x49xbf16, #tpu.memory_space<vmem>>, vector<4x7xbf16>
    tpu.vector_store %arg5[%c8_107, %c14_108], %63 {strides = array<i32>} : memref<48x49xbf16, #tpu.memory_space<vmem>>, vector<4x7xbf16>,
    %c0_109 = arith.constant 0 : index
    %c5 = arith.constant 5 : index
    %c0_110 = arith.constant 0 : index
    %c0_111 = arith.constant 0 : index
    %65 = vector.load %arg3[%c0_109, %c5, %c0_110, %c0_111] : memref<1x30x4x8xbf16, #tpu.memory_space<vmem>>, vector<1x1x4x7xbf16>
    %66 = vector.shape_cast %65 : vector<1x1x4x7xbf16> to vector<4x7xbf16>
    %c12_112 = arith.constant 12 : index
    %c14_113 = arith.constant 14 : index
    %67 = vector.load %arg5[%c12_112, %c14_113] : memref<48x49xbf16, #tpu.memory_space<vmem>>, vector<4x7xbf16>
    tpu.vector_store %arg5[%c12_112, %c14_113], %66 {strides = array<i32>} : memref<48x49xbf16, #tpu.memory_space<vmem>>, vector<4x7xbf16>,
    %c0_114 = arith.constant 0 : index
    %c20_115 = arith.constant 20 : index
    %c0_116 = arith.constant 0 : index
    %c0_117 = arith.constant 0 : index
    %68 = vector.load %arg3[%c0_114, %c20_115, %c0_116, %c0_117] : memref<1x30x4x8xbf16, #tpu.memory_space<vmem>>, vector<1x1x4x7xbf16>
    %69 = vector.shape_cast %68 : vector<1x1x4x7xbf16> to vector<4x7xbf16>
    %c16_118 = arith.constant 16 : index
    %c14_119 = arith.constant 14 : index
    %70 = vector.load %arg5[%c16_118, %c14_119] : memref<48x49xbf16, #tpu.memory_space<vmem>>, vector<4x7xbf16>
    tpu.vector_store %arg5[%c16_118, %c14_119], %69 {strides = array<i32>} : memref<48x49xbf16, #tpu.memory_space<vmem>>, vector<4x7xbf16>,
    %c0_120 = arith.constant 0 : index
    %c5_121 = arith.constant 5 : index
    %c0_122 = arith.constant 0 : index
    %c1_123 = arith.constant 1 : index
    %71 = vector.load %arg3[%c0_120, %c5_121, %c0_122, %c1_123] : memref<1x30x4x8xbf16, #tpu.memory_space<vmem>>, vector<1x1x4x7xbf16>
    %72 = vector.shape_cast %71 : vector<1x1x4x7xbf16> to vector<4x7xbf16>
    %c20_124 = arith.constant 20 : index
    %c14_125 = arith.constant 14 : index
    %73 = vector.load %arg5[%c20_124, %c14_125] : memref<48x49xbf16, #tpu.memory_space<vmem>>, vector<4x7xbf16>
    tpu.vector_store %arg5[%c20_124, %c14_125], %72 {strides = array<i32>} : memref<48x49xbf16, #tpu.memory_space<vmem>>, vector<4x7xbf16>,
    %c0_126 = arith.constant 0 : index
    %c6 = arith.constant 6 : index
    %c0_127 = arith.constant 0 : index
    %c0_128 = arith.constant 0 : index
    %74 = vector.load %arg3[%c0_126, %c6, %c0_127, %c0_128] : memref<1x30x4x8xbf16, #tpu.memory_space<vmem>>, vector<1x1x4x7xbf16>
    %75 = vector.shape_cast %74 : vector<1x1x4x7xbf16> to vector<4x7xbf16>
    %c24_129 = arith.constant 24 : index
    %c14_130 = arith.constant 14 : index
    %76 = vector.load %arg5[%c24_129, %c14_130] : memref<48x49xbf16, #tpu.memory_space<vmem>>, vector<4x7xbf16>
    tpu.vector_store %arg5[%c24_129, %c14_130], %75 {strides = array<i32>} : memref<48x49xbf16, #tpu.memory_space<vmem>>, vector<4x7xbf16>,
    %c0_131 = arith.constant 0 : index
    %c21 = arith.constant 21 : index
    %c0_132 = arith.constant 0 : index
    %c0_133 = arith.constant 0 : index
    %77 = vector.load %arg3[%c0_131, %c21, %c0_132, %c0_133] : memref<1x30x4x8xbf16, #tpu.memory_space<vmem>>, vector<1x1x4x7xbf16>
    %78 = vector.shape_cast %77 : vector<1x1x4x7xbf16> to vector<4x7xbf16>
    %c28_134 = arith.constant 28 : index
    %c14_135 = arith.constant 14 : index
    %79 = vector.load %arg5[%c28_134, %c14_135] : memref<48x49xbf16, #tpu.memory_space<vmem>>, vector<4x7xbf16>
    tpu.vector_store %arg5[%c28_134, %c14_135], %78 {strides = array<i32>} : memref<48x49xbf16, #tpu.memory_space<vmem>>, vector<4x7xbf16>,
    %c0_136 = arith.constant 0 : index
    %c6_137 = arith.constant 6 : index
    %c0_138 = arith.constant 0 : index
    %c1_139 = arith.constant 1 : index
    %80 = vector.load %arg3[%c0_136, %c6_137, %c0_138, %c1_139] : memref<1x30x4x8xbf16, #tpu.memory_space<vmem>>, vector<1x1x4x7xbf16>
    %81 = vector.shape_cast %80 : vector<1x1x4x7xbf16> to vector<4x7xbf16>
    %c32_140 = arith.constant 32 : index
    %c14_141 = arith.constant 14 : index
    %82 = vector.load %arg5[%c32_140, %c14_141] : memref<48x49xbf16, #tpu.memory_space<vmem>>, vector<4x7xbf16>
    tpu.vector_store %arg5[%c32_140, %c14_141], %81 {strides = array<i32>} : memref<48x49xbf16, #tpu.memory_space<vmem>>, vector<4x7xbf16>,
    %c0_142 = arith.constant 0 : index
    %c6_143 = arith.constant 6 : index
    %c0_144 = arith.constant 0 : index
    %c0_145 = arith.constant 0 : index
    %83 = vector.load %arg3[%c0_142, %c6_143, %c0_144, %c0_145] : memref<1x30x4x8xbf16, #tpu.memory_space<vmem>>, vector<1x1x4x7xbf16>
    %84 = vector.shape_cast %83 : vector<1x1x4x7xbf16> to vector<4x7xbf16>
    %c0_146 = arith.constant 0 : index
    %c21_147 = arith.constant 21 : index
    %85 = vector.load %arg5[%c0_146, %c21_147] : memref<48x49xbf16, #tpu.memory_space<vmem>>, vector<4x7xbf16>
    tpu.vector_store %arg5[%c0_146, %c21_147], %84 {strides = array<i32>} : memref<48x49xbf16, #tpu.memory_space<vmem>>, vector<4x7xbf16>,
    %c0_148 = arith.constant 0 : index
    %c21_149 = arith.constant 21 : index
    %c0_150 = arith.constant 0 : index
    %c0_151 = arith.constant 0 : index
    %86 = vector.load %arg3[%c0_148, %c21_149, %c0_150, %c0_151] : memref<1x30x4x8xbf16, #tpu.memory_space<vmem>>, vector<1x1x4x7xbf16>
    %87 = vector.shape_cast %86 : vector<1x1x4x7xbf16> to vector<4x7xbf16>
    %c4_152 = arith.constant 4 : index
    %c21_153 = arith.constant 21 : index
    %88 = vector.load %arg5[%c4_152, %c21_153] : memref<48x49xbf16, #tpu.memory_space<vmem>>, vector<4x7xbf16>
    tpu.vector_store %arg5[%c4_152, %c21_153], %87 {strides = array<i32>} : memref<48x49xbf16, #tpu.memory_space<vmem>>, vector<4x7xbf16>,
    %c0_154 = arith.constant 0 : index
    %c6_155 = arith.constant 6 : index
    %c0_156 = arith.constant 0 : index
    %c1_157 = arith.constant 1 : index
    %89 = vector.load %arg3[%c0_154, %c6_155, %c0_156, %c1_157] : memref<1x30x4x8xbf16, #tpu.memory_space<vmem>>, vector<1x1x4x7xbf16>
    %90 = vector.shape_cast %89 : vector<1x1x4x7xbf16> to vector<4x7xbf16>
    %c8_158 = arith.constant 8 : index
    %c21_159 = arith.constant 21 : index
    %91 = vector.load %arg5[%c8_158, %c21_159] : memref<48x49xbf16, #tpu.memory_space<vmem>>, vector<4x7xbf16>
    tpu.vector_store %arg5[%c8_158, %c21_159], %90 {strides = array<i32>} : memref<48x49xbf16, #tpu.memory_space<vmem>>, vector<4x7xbf16>,
    %c0_160 = arith.constant 0 : index
    %c7_161 = arith.constant 7 : index
    %c0_162 = arith.constant 0 : index
    %c0_163 = arith.constant 0 : index
    %92 = vector.load %arg3[%c0_160, %c7_161, %c0_162, %c0_163] : memref<1x30x4x8xbf16, #tpu.memory_space<vmem>>, vector<1x1x4x7xbf16>
    %93 = vector.shape_cast %92 : vector<1x1x4x7xbf16> to vector<4x7xbf16>
    %c12_164 = arith.constant 12 : index
    %c21_165 = arith.constant 21 : index
    %94 = vector.load %arg5[%c12_164, %c21_165] : memref<48x49xbf16, #tpu.memory_space<vmem>>, vector<4x7xbf16>
    tpu.vector_store %arg5[%c12_164, %c21_165], %93 {strides = array<i32>} : memref<48x49xbf16, #tpu.memory_space<vmem>>, vector<4x7xbf16>,
    %c0_166 = arith.constant 0 : index
    %c22 = arith.constant 22 : index
    %c0_167 = arith.constant 0 : index
    %c0_168 = arith.constant 0 : index
    %95 = vector.load %arg3[%c0_166, %c22, %c0_167, %c0_168] : memref<1x30x4x8xbf16, #tpu.memory_space<vmem>>, vector<1x1x4x7xbf16>
    %96 = vector.shape_cast %95 : vector<1x1x4x7xbf16> to vector<4x7xbf16>
    %c16_169 = arith.constant 16 : index
    %c21_170 = arith.constant 21 : index
    %97 = vector.load %arg5[%c16_169, %c21_170] : memref<48x49xbf16, #tpu.memory_space<vmem>>, vector<4x7xbf16>
    tpu.vector_store %arg5[%c16_169, %c21_170], %96 {strides = array<i32>} : memref<48x49xbf16, #tpu.memory_space<vmem>>, vector<4x7xbf16>,
    %c0_171 = arith.constant 0 : index
    %c7_172 = arith.constant 7 : index
    %c0_173 = arith.constant 0 : index
    %c1_174 = arith.constant 1 : index
    %98 = vector.load %arg3[%c0_171, %c7_172, %c0_173, %c1_174] : memref<1x30x4x8xbf16, #tpu.memory_space<vmem>>, vector<1x1x4x7xbf16>
    %99 = vector.shape_cast %98 : vector<1x1x4x7xbf16> to vector<4x7xbf16>
    %c20_175 = arith.constant 20 : index
    %c21_176 = arith.constant 21 : index
    %100 = vector.load %arg5[%c20_175, %c21_176] : memref<48x49xbf16, #tpu.memory_space<vmem>>, vector<4x7xbf16>
    tpu.vector_store %arg5[%c20_175, %c21_176], %99 {strides = array<i32>} : memref<48x49xbf16, #tpu.memory_space<vmem>>, vector<4x7xbf16>,
    %c0_177 = arith.constant 0 : index
    %c8_178 = arith.constant 8 : index
    %c0_179 = arith.constant 0 : index
    %c0_180 = arith.constant 0 : index
    %101 = vector.load %arg3[%c0_177, %c8_178, %c0_179, %c0_180] : memref<1x30x4x8xbf16, #tpu.memory_space<vmem>>, vector<1x1x4x7xbf16>
    %102 = vector.shape_cast %101 : vector<1x1x4x7xbf16> to vector<4x7xbf16>
    %c24_181 = arith.constant 24 : index
    %c21_182 = arith.constant 21 : index
    %103 = vector.load %arg5[%c24_181, %c21_182] : memref<48x49xbf16, #tpu.memory_space<vmem>>, vector<4x7xbf16>
    tpu.vector_store %arg5[%c24_181, %c21_182], %102 {strides = array<i32>} : memref<48x49xbf16, #tpu.memory_space<vmem>>, vector<4x7xbf16>,
    %c0_183 = arith.constant 0 : index
    %c23 = arith.constant 23 : index
    %c0_184 = arith.constant 0 : index
    %c0_185 = arith.constant 0 : index
    %104 = vector.load %arg3[%c0_183, %c23, %c0_184, %c0_185] : memref<1x30x4x8xbf16, #tpu.memory_space<vmem>>, vector<1x1x4x7xbf16>
    %105 = vector.shape_cast %104 : vector<1x1x4x7xbf16> to vector<4x7xbf16>
    %c28_186 = arith.constant 28 : index
    %c21_187 = arith.constant 21 : index
    %106 = vector.load %arg5[%c28_186, %c21_187] : memref<48x49xbf16, #tpu.memory_space<vmem>>, vector<4x7xbf16>
    tpu.vector_store %arg5[%c28_186, %c21_187], %105 {strides = array<i32>} : memref<48x49xbf16, #tpu.memory_space<vmem>>, vector<4x7xbf16>,
    %c0_188 = arith.constant 0 : index
    %c8_189 = arith.constant 8 : index
    %c0_190 = arith.constant 0 : index
    %c1_191 = arith.constant 1 : index
    %107 = vector.load %arg3[%c0_188, %c8_189, %c0_190, %c1_191] : memref<1x30x4x8xbf16, #tpu.memory_space<vmem>>, vector<1x1x4x7xbf16>
    %108 = vector.shape_cast %107 : vector<1x1x4x7xbf16> to vector<4x7xbf16>
    %c32_192 = arith.constant 32 : index
    %c21_193 = arith.constant 21 : index
    %109 = vector.load %arg5[%c32_192, %c21_193] : memref<48x49xbf16, #tpu.memory_space<vmem>>, vector<4x7xbf16>
    tpu.vector_store %arg5[%c32_192, %c21_193], %108 {strides = array<i32>} : memref<48x49xbf16, #tpu.memory_space<vmem>>, vector<4x7xbf16>,
    %c0_194 = arith.constant 0 : index
    %c8_195 = arith.constant 8 : index
    %c0_196 = arith.constant 0 : index
    %c0_197 = arith.constant 0 : index
    %110 = vector.load %arg3[%c0_194, %c8_195, %c0_196, %c0_197] : memref<1x30x4x8xbf16, #tpu.memory_space<vmem>>, vector<1x1x4x7xbf16>
    %111 = vector.shape_cast %110 : vector<1x1x4x7xbf16> to vector<4x7xbf16>
    %c0_198 = arith.constant 0 : index
    %c28_199 = arith.constant 28 : index
    %112 = vector.load %arg5[%c0_198, %c28_199] : memref<48x49xbf16, #tpu.memory_space<vmem>>, vector<4x7xbf16>
    tpu.vector_store %arg5[%c0_198, %c28_199], %111 {strides = array<i32>} : memref<48x49xbf16, #tpu.memory_space<vmem>>, vector<4x7xbf16>,
    %c0_200 = arith.constant 0 : index
    %c23_201 = arith.constant 23 : index
    %c0_202 = arith.constant 0 : index
    %c0_203 = arith.constant 0 : index
    %113 = vector.load %arg3[%c0_200, %c23_201, %c0_202, %c0_203] : memref<1x30x4x8xbf16, #tpu.memory_space<vmem>>, vector<1x1x4x7xbf16>
    %114 = vector.shape_cast %113 : vector<1x1x4x7xbf16> to vector<4x7xbf16>
    %c4_204 = arith.constant 4 : index
    %c28_205 = arith.constant 28 : index
    %115 = vector.load %arg5[%c4_204, %c28_205] : memref<48x49xbf16, #tpu.memory_space<vmem>>, vector<4x7xbf16>
    tpu.vector_store %arg5[%c4_204, %c28_205], %114 {strides = array<i32>} : memref<48x49xbf16, #tpu.memory_space<vmem>>, vector<4x7xbf16>,
    %c0_206 = arith.constant 0 : index
    %c8_207 = arith.constant 8 : index
    %c0_208 = arith.constant 0 : index
    %c1_209 = arith.constant 1 : index
    %116 = vector.load %arg3[%c0_206, %c8_207, %c0_208, %c1_209] : memref<1x30x4x8xbf16, #tpu.memory_space<vmem>>, vector<1x1x4x7xbf16>
    %117 = vector.shape_cast %116 : vector<1x1x4x7xbf16> to vector<4x7xbf16>
    %c8_210 = arith.constant 8 : index
    %c28_211 = arith.constant 28 : index
    %118 = vector.load %arg5[%c8_210, %c28_211] : memref<48x49xbf16, #tpu.memory_space<vmem>>, vector<4x7xbf16>
    tpu.vector_store %arg5[%c8_210, %c28_211], %117 {strides = array<i32>} : memref<48x49xbf16, #tpu.memory_space<vmem>>, vector<4x7xbf16>,
    %c0_212 = arith.constant 0 : index
    %c9 = arith.constant 9 : index
    %c0_213 = arith.constant 0 : index
    %c0_214 = arith.constant 0 : index
    %119 = vector.load %arg3[%c0_212, %c9, %c0_213, %c0_214] : memref<1x30x4x8xbf16, #tpu.memory_space<vmem>>, vector<1x1x4x7xbf16>
    %120 = vector.shape_cast %119 : vector<1x1x4x7xbf16> to vector<4x7xbf16>
    %c12_215 = arith.constant 12 : index
    %c28_216 = arith.constant 28 : index
    %121 = vector.load %arg5[%c12_215, %c28_216] : memref<48x49xbf16, #tpu.memory_space<vmem>>, vector<4x7xbf16>
    tpu.vector_store %arg5[%c12_215, %c28_216], %120 {strides = array<i32>} : memref<48x49xbf16, #tpu.memory_space<vmem>>, vector<4x7xbf16>,
    %c0_217 = arith.constant 0 : index
    %c24_218 = arith.constant 24 : index
    %c0_219 = arith.constant 0 : index
    %c0_220 = arith.constant 0 : index
    %122 = vector.load %arg3[%c0_217, %c24_218, %c0_219, %c0_220] : memref<1x30x4x8xbf16, #tpu.memory_space<vmem>>, vector<1x1x4x7xbf16>
    %123 = vector.shape_cast %122 : vector<1x1x4x7xbf16> to vector<4x7xbf16>
    %c16_221 = arith.constant 16 : index
    %c28_222 = arith.constant 28 : index
    %124 = vector.load %arg5[%c16_221, %c28_222] : memref<48x49xbf16, #tpu.memory_space<vmem>>, vector<4x7xbf16>
    tpu.vector_store %arg5[%c16_221, %c28_222], %123 {strides = array<i32>} : memref<48x49xbf16, #tpu.memory_space<vmem>>, vector<4x7xbf16>,
    %c0_223 = arith.constant 0 : index
    %c9_224 = arith.constant 9 : index
    %c0_225 = arith.constant 0 : index
    %c1_226 = arith.constant 1 : index
    %125 = vector.load %arg3[%c0_223, %c9_224, %c0_225, %c1_226] : memref<1x30x4x8xbf16, #tpu.memory_space<vmem>>, vector<1x1x4x7xbf16>
    %126 = vector.shape_cast %125 : vector<1x1x4x7xbf16> to vector<4x7xbf16>
    %c20_227 = arith.constant 20 : index
    %c28_228 = arith.constant 28 : index
    %127 = vector.load %arg5[%c20_227, %c28_228] : memref<48x49xbf16, #tpu.memory_space<vmem>>, vector<4x7xbf16>
    tpu.vector_store %arg5[%c20_227, %c28_228], %126 {strides = array<i32>} : memref<48x49xbf16, #tpu.memory_space<vmem>>, vector<4x7xbf16>,
    %c0_229 = arith.constant 0 : index
    %c10 = arith.constant 10 : index
    %c0_230 = arith.constant 0 : index
    %c0_231 = arith.constant 0 : index
    %128 = vector.load %arg3[%c0_229, %c10, %c0_230, %c0_231] : memref<1x30x4x8xbf16, #tpu.memory_space<vmem>>, vector<1x1x4x7xbf16>
    %129 = vector.shape_cast %128 : vector<1x1x4x7xbf16> to vector<4x7xbf16>
    %c24_232 = arith.constant 24 : index
    %c28_233 = arith.constant 28 : index
    %130 = vector.load %arg5[%c24_232, %c28_233] : memref<48x49xbf16, #tpu.memory_space<vmem>>, vector<4x7xbf16>
    tpu.vector_store %arg5[%c24_232, %c28_233], %129 {strides = array<i32>} : memref<48x49xbf16, #tpu.memory_space<vmem>>, vector<4x7xbf16>,
    %c0_234 = arith.constant 0 : index
    %c25 = arith.constant 25 : index
    %c0_235 = arith.constant 0 : index
    %c0_236 = arith.constant 0 : index
    %131 = vector.load %arg3[%c0_234, %c25, %c0_235, %c0_236] : memref<1x30x4x8xbf16, #tpu.memory_space<vmem>>, vector<1x1x4x7xbf16>
    %132 = vector.shape_cast %131 : vector<1x1x4x7xbf16> to vector<4x7xbf16>
    %c28_237 = arith.constant 28 : index
    %c28_238 = arith.constant 28 : index
    %133 = vector.load %arg5[%c28_237, %c28_238] : memref<48x49xbf16, #tpu.memory_space<vmem>>, vector<4x7xbf16>
    tpu.vector_store %arg5[%c28_237, %c28_238], %132 {strides = array<i32>} : memref<48x49xbf16, #tpu.memory_space<vmem>>, vector<4x7xbf16>,
    %c0_239 = arith.constant 0 : index
    %c10_240 = arith.constant 10 : index
    %c0_241 = arith.constant 0 : index
    %c1_242 = arith.constant 1 : index
    %134 = vector.load %arg3[%c0_239, %c10_240, %c0_241, %c1_242] : memref<1x30x4x8xbf16, #tpu.memory_space<vmem>>, vector<1x1x4x7xbf16>
    %135 = vector.shape_cast %134 : vector<1x1x4x7xbf16> to vector<4x7xbf16>
    %c32_243 = arith.constant 32 : index
    %c28_244 = arith.constant 28 : index
    %136 = vector.load %arg5[%c32_243, %c28_244] : memref<48x49xbf16, #tpu.memory_space<vmem>>, vector<4x7xbf16>
    tpu.vector_store %arg5[%c32_243, %c28_244], %135 {strides = array<i32>} : memref<48x49xbf16, #tpu.memory_space<vmem>>, vector<4x7xbf16>,
    %c0_245 = arith.constant 0 : index
    %c10_246 = arith.constant 10 : index
    %c0_247 = arith.constant 0 : index
    %c0_248 = arith.constant 0 : index
    %137 = vector.load %arg3[%c0_245, %c10_246, %c0_247, %c0_248] : memref<1x30x4x8xbf16, #tpu.memory_space<vmem>>, vector<1x1x4x7xbf16>
    %138 = vector.shape_cast %137 : vector<1x1x4x7xbf16> to vector<4x7xbf16>
    %c0_249 = arith.constant 0 : index
    %c35 = arith.constant 35 : index
    %139 = vector.load %arg5[%c0_249, %c35] : memref<48x49xbf16, #tpu.memory_space<vmem>>, vector<4x7xbf16>
    tpu.vector_store %arg5[%c0_249, %c35], %138 {strides = array<i32>} : memref<48x49xbf16, #tpu.memory_space<vmem>>, vector<4x7xbf16>,
    %c0_250 = arith.constant 0 : index
    %c25_251 = arith.constant 25 : index
    %c0_252 = arith.constant 0 : index
    %c0_253 = arith.constant 0 : index
    %140 = vector.load %arg3[%c0_250, %c25_251, %c0_252, %c0_253] : memref<1x30x4x8xbf16, #tpu.memory_space<vmem>>, vector<1x1x4x7xbf16>
    %141 = vector.shape_cast %140 : vector<1x1x4x7xbf16> to vector<4x7xbf16>
    %c4_254 = arith.constant 4 : index
    %c35_255 = arith.constant 35 : index
    %142 = vector.load %arg5[%c4_254, %c35_255] : memref<48x49xbf16, #tpu.memory_space<vmem>>, vector<4x7xbf16>
    tpu.vector_store %arg5[%c4_254, %c35_255], %141 {strides = array<i32>} : memref<48x49xbf16, #tpu.memory_space<vmem>>, vector<4x7xbf16>,
    %c0_256 = arith.constant 0 : index
    %c10_257 = arith.constant 10 : index
    %c0_258 = arith.constant 0 : index
    %c1_259 = arith.constant 1 : index
    %143 = vector.load %arg3[%c0_256, %c10_257, %c0_258, %c1_259] : memref<1x30x4x8xbf16, #tpu.memory_space<vmem>>, vector<1x1x4x7xbf16>
    %144 = vector.shape_cast %143 : vector<1x1x4x7xbf16> to vector<4x7xbf16>
    %c8_260 = arith.constant 8 : index
    %c35_261 = arith.constant 35 : index
    %145 = vector.load %arg5[%c8_260, %c35_261] : memref<48x49xbf16, #tpu.memory_space<vmem>>, vector<4x7xbf16>
    tpu.vector_store %arg5[%c8_260, %c35_261], %144 {strides = array<i32>} : memref<48x49xbf16, #tpu.memory_space<vmem>>, vector<4x7xbf16>,
    %c0_262 = arith.constant 0 : index
    %c11 = arith.constant 11 : index
    %c0_263 = arith.constant 0 : index
    %c0_264 = arith.constant 0 : index
    %146 = vector.load %arg3[%c0_262, %c11, %c0_263, %c0_264] : memref<1x30x4x8xbf16, #tpu.memory_space<vmem>>, vector<1x1x4x7xbf16>
    %147 = vector.shape_cast %146 : vector<1x1x4x7xbf16> to vector<4x7xbf16>
    %c12_265 = arith.constant 12 : index
    %c35_266 = arith.constant 35 : index
    %148 = vector.load %arg5[%c12_265, %c35_266] : memref<48x49xbf16, #tpu.memory_space<vmem>>, vector<4x7xbf16>
    tpu.vector_store %arg5[%c12_265, %c35_266], %147 {strides = array<i32>} : memref<48x49xbf16, #tpu.memory_space<vmem>>, vector<4x7xbf16>,
    %c0_267 = arith.constant 0 : index
    %c26 = arith.constant 26 : index
    %c0_268 = arith.constant 0 : index
    %c0_269 = arith.constant 0 : index
    %149 = vector.load %arg3[%c0_267, %c26, %c0_268, %c0_269] : memref<1x30x4x8xbf16, #tpu.memory_space<vmem>>, vector<1x1x4x7xbf16>
    %150 = vector.shape_cast %149 : vector<1x1x4x7xbf16> to vector<4x7xbf16>
    %c16_270 = arith.constant 16 : index
    %c35_271 = arith.constant 35 : index
    %151 = vector.load %arg5[%c16_270, %c35_271] : memref<48x49xbf16, #tpu.memory_space<vmem>>, vector<4x7xbf16>
    tpu.vector_store %arg5[%c16_270, %c35_271], %150 {strides = array<i32>} : memref<48x49xbf16, #tpu.memory_space<vmem>>, vector<4x7xbf16>,
    %c0_272 = arith.constant 0 : index
    %c11_273 = arith.constant 11 : index
    %c0_274 = arith.constant 0 : index
    %c1_275 = arith.constant 1 : index
    %152 = vector.load %arg3[%c0_272, %c11_273, %c0_274, %c1_275] : memref<1x30x4x8xbf16, #tpu.memory_space<vmem>>, vector<1x1x4x7xbf16>
    %153 = vector.shape_cast %152 : vector<1x1x4x7xbf16> to vector<4x7xbf16>
    %c20_276 = arith.constant 20 : index
    %c35_277 = arith.constant 35 : index
    %154 = vector.load %arg5[%c20_276, %c35_277] : memref<48x49xbf16, #tpu.memory_space<vmem>>, vector<4x7xbf16>
    tpu.vector_store %arg5[%c20_276, %c35_277], %153 {strides = array<i32>} : memref<48x49xbf16, #tpu.memory_space<vmem>>, vector<4x7xbf16>,
    %c0_278 = arith.constant 0 : index
    %c12_279 = arith.constant 12 : index
    %c0_280 = arith.constant 0 : index
    %c0_281 = arith.constant 0 : index
    %155 = vector.load %arg3[%c0_278, %c12_279, %c0_280, %c0_281] : memref<1x30x4x8xbf16, #tpu.memory_space<vmem>>, vector<1x1x4x7xbf16>
    %156 = vector.shape_cast %155 : vector<1x1x4x7xbf16> to vector<4x7xbf16>
    %c24_282 = arith.constant 24 : index
    %c35_283 = arith.constant 35 : index
    %157 = vector.load %arg5[%c24_282, %c35_283] : memref<48x49xbf16, #tpu.memory_space<vmem>>, vector<4x7xbf16>
    tpu.vector_store %arg5[%c24_282, %c35_283], %156 {strides = array<i32>} : memref<48x49xbf16, #tpu.memory_space<vmem>>, vector<4x7xbf16>,
    %c0_284 = arith.constant 0 : index
    %c27 = arith.constant 27 : index
    %c0_285 = arith.constant 0 : index
    %c0_286 = arith.constant 0 : index
    %158 = vector.load %arg3[%c0_284, %c27, %c0_285, %c0_286] : memref<1x30x4x8xbf16, #tpu.memory_space<vmem>>, vector<1x1x4x7xbf16>
    %159 = vector.shape_cast %158 : vector<1x1x4x7xbf16> to vector<4x7xbf16>
    %c28_287 = arith.constant 28 : index
    %c35_288 = arith.constant 35 : index
    %160 = vector.load %arg5[%c28_287, %c35_288] : memref<48x49xbf16, #tpu.memory_space<vmem>>, vector<4x7xbf16>
    tpu.vector_store %arg5[%c28_287, %c35_288], %159 {strides = array<i32>} : memref<48x49xbf16, #tpu.memory_space<vmem>>, vector<4x7xbf16>,
    %c0_289 = arith.constant 0 : index
    %c12_290 = arith.constant 12 : index
    %c0_291 = arith.constant 0 : index
    %c1_292 = arith.constant 1 : index
    %161 = vector.load %arg3[%c0_289, %c12_290, %c0_291, %c1_292] : memref<1x30x4x8xbf16, #tpu.memory_space<vmem>>, vector<1x1x4x7xbf16>
    %162 = vector.shape_cast %161 : vector<1x1x4x7xbf16> to vector<4x7xbf16>
    %c32_293 = arith.constant 32 : index
    %c35_294 = arith.constant 35 : index
    %163 = vector.load %arg5[%c32_293, %c35_294] : memref<48x49xbf16, #tpu.memory_space<vmem>>, vector<4x7xbf16>
    tpu.vector_store %arg5[%c32_293, %c35_294], %162 {strides = array<i32>} : memref<48x49xbf16, #tpu.memory_space<vmem>>, vector<4x7xbf16>,
    %c0_295 = arith.constant 0 : index
    %c12_296 = arith.constant 12 : index
    %c0_297 = arith.constant 0 : index
    %c0_298 = arith.constant 0 : index
    %164 = vector.load %arg3[%c0_295, %c12_296, %c0_297, %c0_298] : memref<1x30x4x8xbf16, #tpu.memory_space<vmem>>, vector<1x1x4x7xbf16>
    %165 = vector.shape_cast %164 : vector<1x1x4x7xbf16> to vector<4x7xbf16>
    %c0_299 = arith.constant 0 : index
    %c42 = arith.constant 42 : index
    %166 = vector.load %arg5[%c0_299, %c42] : memref<48x49xbf16, #tpu.memory_space<vmem>>, vector<4x7xbf16>
    tpu.vector_store %arg5[%c0_299, %c42], %165 {strides = array<i32>} : memref<48x49xbf16, #tpu.memory_space<vmem>>, vector<4x7xbf16>,
    %c0_300 = arith.constant 0 : index
    %c27_301 = arith.constant 27 : index
    %c0_302 = arith.constant 0 : index
    %c0_303 = arith.constant 0 : index
    %167 = vector.load %arg3[%c0_300, %c27_301, %c0_302, %c0_303] : memref<1x30x4x8xbf16, #tpu.memory_space<vmem>>, vector<1x1x4x7xbf16>
    %168 = vector.shape_cast %167 : vector<1x1x4x7xbf16> to vector<4x7xbf16>
    %c4_304 = arith.constant 4 : index
    %c42_305 = arith.constant 42 : index
    %169 = vector.load %arg5[%c4_304, %c42_305] : memref<48x49xbf16, #tpu.memory_space<vmem>>, vector<4x7xbf16>
    tpu.vector_store %arg5[%c4_304, %c42_305], %168 {strides = array<i32>} : memref<48x49xbf16, #tpu.memory_space<vmem>>, vector<4x7xbf16>,
    %c0_306 = arith.constant 0 : index
    %c12_307 = arith.constant 12 : index
    %c0_308 = arith.constant 0 : index
    %c1_309 = arith.constant 1 : index
    %170 = vector.load %arg3[%c0_306, %c12_307, %c0_308, %c1_309] : memref<1x30x4x8xbf16, #tpu.memory_space<vmem>>, vector<1x1x4x7xbf16>
    %171 = vector.shape_cast %170 : vector<1x1x4x7xbf16> to vector<4x7xbf16>
    %c8_310 = arith.constant 8 : index
    %c42_311 = arith.constant 42 : index
    %172 = vector.load %arg5[%c8_310, %c42_311] : memref<48x49xbf16, #tpu.memory_space<vmem>>, vector<4x7xbf16>
    tpu.vector_store %arg5[%c8_310, %c42_311], %171 {strides = array<i32>} : memref<48x49xbf16, #tpu.memory_space<vmem>>, vector<4x7xbf16>,
    %c0_312 = arith.constant 0 : index
    %c13 = arith.constant 13 : index
    %c0_313 = arith.constant 0 : index
    %c0_314 = arith.constant 0 : index
    %173 = vector.load %arg3[%c0_312, %c13, %c0_313, %c0_314] : memref<1x30x4x8xbf16, #tpu.memory_space<vmem>>, vector<1x1x4x7xbf16>
    %174 = vector.shape_cast %173 : vector<1x1x4x7xbf16> to vector<4x7xbf16>
    %c12_315 = arith.constant 12 : index
    %c42_316 = arith.constant 42 : index
    %175 = vector.load %arg5[%c12_315, %c42_316] : memref<48x49xbf16, #tpu.memory_space<vmem>>, vector<4x7xbf16>
    tpu.vector_store %arg5[%c12_315, %c42_316], %174 {strides = array<i32>} : memref<48x49xbf16, #tpu.memory_space<vmem>>, vector<4x7xbf16>,
    %c0_317 = arith.constant 0 : index
    %c28_318 = arith.constant 28 : index
    %c0_319 = arith.constant 0 : index
    %c0_320 = arith.constant 0 : index
    %176 = vector.load %arg3[%c0_317, %c28_318, %c0_319, %c0_320] : memref<1x30x4x8xbf16, #tpu.memory_space<vmem>>, vector<1x1x4x7xbf16>
    %177 = vector.shape_cast %176 : vector<1x1x4x7xbf16> to vector<4x7xbf16>
    %c16_321 = arith.constant 16 : index
    %c42_322 = arith.constant 42 : index
    %178 = vector.load %arg5[%c16_321, %c42_322] : memref<48x49xbf16, #tpu.memory_space<vmem>>, vector<4x7xbf16>
    tpu.vector_store %arg5[%c16_321, %c42_322], %177 {strides = array<i32>} : memref<48x49xbf16, #tpu.memory_space<vmem>>, vector<4x7xbf16>,
    %c0_323 = arith.constant 0 : index
    %c13_324 = arith.constant 13 : index
    %c0_325 = arith.constant 0 : index
    %c1_326 = arith.constant 1 : index
    %179 = vector.load %arg3[%c0_323, %c13_324, %c0_325, %c1_326] : memref<1x30x4x8xbf16, #tpu.memory_space<vmem>>, vector<1x1x4x7xbf16>
    %180 = vector.shape_cast %179 : vector<1x1x4x7xbf16> to vector<4x7xbf16>
    %c20_327 = arith.constant 20 : index
    %c42_328 = arith.constant 42 : index
    %181 = vector.load %arg5[%c20_327, %c42_328] : memref<48x49xbf16, #tpu.memory_space<vmem>>, vector<4x7xbf16>
    tpu.vector_store %arg5[%c20_327, %c42_328], %180 {strides = array<i32>} : memref<48x49xbf16, #tpu.memory_space<vmem>>, vector<4x7xbf16>,
    %c0_329 = arith.constant 0 : index
    %c14_330 = arith.constant 14 : index
    %c0_331 = arith.constant 0 : index
    %c0_332 = arith.constant 0 : index
    %182 = vector.load %arg3[%c0_329, %c14_330, %c0_331, %c0_332] : memref<1x30x4x8xbf16, #tpu.memory_space<vmem>>, vector<1x1x4x7xbf16>
    %183 = vector.shape_cast %182 : vector<1x1x4x7xbf16> to vector<4x7xbf16>
    %c24_333 = arith.constant 24 : index
    %c42_334 = arith.constant 42 : index
    %184 = vector.load %arg5[%c24_333, %c42_334] : memref<48x49xbf16, #tpu.memory_space<vmem>>, vector<4x7xbf16>
    tpu.vector_store %arg5[%c24_333, %c42_334], %183 {strides = array<i32>} : memref<48x49xbf16, #tpu.memory_space<vmem>>, vector<4x7xbf16>,
    %c0_335 = arith.constant 0 : index
    %c29 = arith.constant 29 : index
    %c0_336 = arith.constant 0 : index
    %c0_337 = arith.constant 0 : index
    %185 = vector.load %arg3[%c0_335, %c29, %c0_336, %c0_337] : memref<1x30x4x8xbf16, #tpu.memory_space<vmem>>, vector<1x1x4x7xbf16>
    %186 = vector.shape_cast %185 : vector<1x1x4x7xbf16> to vector<4x7xbf16>
    %c28_338 = arith.constant 28 : index
    %c42_339 = arith.constant 42 : index
    %187 = vector.load %arg5[%c28_338, %c42_339] : memref<48x49xbf16, #tpu.memory_space<vmem>>, vector<4x7xbf16>
    tpu.vector_store %arg5[%c28_338, %c42_339], %186 {strides = array<i32>} : memref<48x49xbf16, #tpu.memory_space<vmem>>, vector<4x7xbf16>,
    %c0_340 = arith.constant 0 : index
    %c14_341 = arith.constant 14 : index
    %c0_342 = arith.constant 0 : index
    %c1_343 = arith.constant 1 : index
    %188 = vector.load %arg3[%c0_340, %c14_341, %c0_342, %c1_343] : memref<1x30x4x8xbf16, #tpu.memory_space<vmem>>, vector<1x1x4x7xbf16>
    %189 = vector.shape_cast %188 : vector<1x1x4x7xbf16> to vector<4x7xbf16>
    %c32_344 = arith.constant 32 : index
    %c42_345 = arith.constant 42 : index
    %190 = vector.load %arg5[%c32_344, %c42_345] : memref<48x49xbf16, #tpu.memory_space<vmem>>, vector<4x7xbf16>
    tpu.vector_store %arg5[%c32_344, %c42_345], %189 {strides = array<i32>} : memref<48x49xbf16, #tpu.memory_space<vmem>>, vector<4x7xbf16>,
    %c0_346 = arith.constant 0 : index
    %c0_347 = arith.constant 0 : index
    %191 = vector.load %arg1[%c0_346, %c0_347] : memref<8x48xbf16, #tpu.memory_space<vmem>>, vector<8x48xbf16>
    %c0_348 = arith.constant 0 : index
    %c0_349 = arith.constant 0 : index
    %192 = vector.load %arg5[%c0_348, %c0_349] : memref<48x49xbf16, #tpu.memory_space<vmem>>, vector<48x49xbf16>
    %cst_350 = arith.constant dense<0.000000e+00> : vector<8x49xf32>
    %193 = tpu.matmul %191, %192, %cst_350 {dimension_numbers = #tpu.dot_dimension_numbers<[1], [0], [0], [1], [0, 0, 1, 1], [], []>} : vector<8x48xbf16>, vector<48x49xbf16>, vector<8x49xf32> -> vector<8x49xf32>
    %c0_351 = arith.constant 0 : index
    %c0_352 = arith.constant 0 : index
    %194 = vector.load %arg2[%c0_351, %c0_352] : memref<8x1xf32, #tpu.memory_space<vmem>>, vector<8x1xf32>
    %195 = vector.broadcast %194 : vector<8x1xf32> to vector<8x49xf32>
    %196 = arith.addf %193, %195 : vector<8x49xf32>
    %cst_353 = arith.constant 0.000000e+00 : f32
    %197 = vector.broadcast %cst_353 : f32 to vector<8x49xf32>
    %198 = arith.maximumf %196, %197 : vector<8x49xf32>
    %c0_354 = arith.constant 0 : index
    %c0_355 = arith.constant 0 : index
    %c0_356 = arith.constant 0 : index
    %199 = vector.load %arg4[%c0_354, %c0_355, %c0_356] : memref<1x8x49xf32, #tpu.memory_space<vmem>>, vector<1x8x49xf32>
    %200 = vector.shape_cast %199 : vector<1x8x49xf32> to vector<8x49xf32>
    %201 = vector.shape_cast %198 : vector<8x49xf32> to vector<1x8x49xf32>
    tpu.vector_store %arg4[%c0_354, %c0_355, %c0_356], %201 {strides = array<i32>} : memref<1x8x49xf32, #tpu.memory_space<vmem>>, vector<1x8x49xf32>,
    return
  }
  func.func @transform_0(%arg0: i32) -> (i32, i32) {
    %c0_i32 = arith.constant 0 : i32
    %c0_i32_0 = arith.constant 0 : i32
    %c0_i32_1 = arith.constant 0 : i32
    return %c0_i32, %c0_i32_0 : i32, i32
  }
  func.func @transform_1(%arg0: i32) -> (i32, i32) {
    %c0_i32 = arith.constant 0 : i32
    %c0_i32_0 = arith.constant 0 : i32
    %c0_i32_1 = arith.constant 0 : i32
    return %c0_i32, %c0_i32_0 : i32, i32
  }
  func.func @transform_2(%arg0: i32) -> (i32, i32, i32, i32) {
    %c0_i32 = arith.constant 0 : i32
    %c0_i32_0 = arith.constant 0 : i32
    %c0_i32_1 = arith.constant 0 : i32
    %c0_i32_2 = arith.constant 0 : i32
    return %arg0, %c0_i32, %c0_i32_0, %c0_i32_1 : i32, i32, i32, i32
  }
  func.func @transform_3(%arg0: i32) -> (i32, i32, i32) {
    %c0_i32 = arith.constant 0 : i32
    %c0_i32_0 = arith.constant 0 : i32
    %c0_i32_1 = arith.constant 0 : i32
    return %arg0, %c0_i32, %c0_i32_0 : i32, i32, i32
  }
}

</mosaic_0001>

<bundles_post_ra>
// kernel: ladder_fconv_block_forward.1
= control target key start
LH: loop header
LB: loop body
LE: loop exit
PB: predicated region body
PF: predicated region fallthrough
CT: control target
= control target key end

     0   :  { %s1403_s12 = smov 0   ;;  %s1700_s0 = inlined_call_operand.vmem [shape: bf16[8,48], index: 0, kind: input, shape index: {}]   ;;  %s1701_s1 = inlined_call_operand.vmem [shape: f32[8,1], index: 1, kind: input, shape index: {}]   ;;  %s1702_s2 = inlined_call_operand.vmem [shape: bf16[2,30,4,8], index: 2, kind: input, shape index: {}]   ;;  %s1703_s3 = inlined_call_operand.vmem [shape: f32[2,8,49], index: 3, kind: output, shape index: {}]  }
   0x1 LB: > { %s1184_s13 = sadd.s32 4294967295, %s1364_s12   ;;  %p1188_p0 = scmp.ge.s32.totalorder %s1364_s12, 1  ;;  %s1364_s12 = sphi %s1403_s12, %s13_s12  }
   0x2   : > { %p137_p1 = scmp.lt.s32.totalorder %s1364_s12, 3 }
   0x4   : > { %p138_p2 = pnand %p1188_p0, %p137_p1 }
   0x5   : > { %p160_p3 = scmp.lt.s32.totalorder (!%p138_p2), %s1184_s13, 1  ;;  %v1366_v0 = vmov (!%p138_p2), 1983009808   ;;  %v182_v2 = vlaneseq (!%p138_p2)  ;;  %s1367_s18 = smov (!%p138_p2), 14   ;;  %vm202_vm0 = vcmask (!%p138_p2), 54276   ;;  %vm1704_vm1 = vcmask (!%p138_p2), 50176  }
   0x6   : > { %141 = sbr.rel (%p138_p2) target bundleno = 474 (0x1da), region = 32  ;;  %v180_v1 = vunpack.c.l.s4 (!%p138_p2), %v1366_v0  ;;  %s1368_s19 = smov (!%p138_p2), 7   ;;  %vm187_vm2 = vcmask (!%p138_p2), 52226   ;;  %vm217_vm3 = vcmask (!%p138_p2), 56326   ;;  %vm170_vm4 = vcmask (!%p138_p2), 400386  }
   0x7   : > { %v183_v4 = vshrl.u32 (!%p138_p2), %v182_v2, 7  ;;  %s1369_s20 = smov (!%p138_p2), 6   ;;  %s1370_s21 = smov (!%p138_p2), 127   ;;  %vm1382_vm5 = vmmov (!%p138_p2), 0   ;;  %vm288_vm6 = vcmask (!%p138_p2), 107576   ;;  %vm421_vm7 = vcmask (!%p138_p2), 164976  }
   0x8   : > { %v181_v3 = vunpack.c.0.s8 (!%p138_p2), %v180_v1  ;;  %s1371_s22 = smov (!%p138_p2), 13   ;;  %s1372_s23 = smov (!%p138_p2), 21   ;;  %vm318_vm8 = vcmask (!%p138_p2), 111676   ;;  %vm451_vm9 = vcmask (!%p138_p2), 169076   ;;  %vm303_vm10 = vcmask (!%p138_p2), 109626  }
   0x9   : > { %s1373_s24 = smov (!%p138_p2), 20   ;;  %s1374_s25 = smov (!%p138_p2), 28   ;;  %vm335_vm11 = vcmask (!%p138_p2), 113726   ;;  %vm436_vm12 = vcmask (!%p138_p2), 167026   ;;  %vm554_vm13 = vcmask (!%p138_p2), 222376   ;;  %vm468_vm14 = vcmask (!%p138_p2), 171126  }
   0xa   : > { %v1432_v9 = vsub.s32 (!%p138_p2), %v181_v3, %v183_v4  ;;  %s1375_s26 = smov (!%p138_p2), 27   ;;  %s1376_s27 = smov (!%p138_p2), 35   ;;  %vm1705_vm15 = vcmask (!%p138_p2), 226476  }
   0xb   : > { %s1377_s28 = smov (!%p138_p2), 34   ;;  %s1379_s29 = smov (!%p138_p2), 42  }
   0xc   : > { %s1380_s30 = smov (!%p138_p2), 41  }
   0xd   : > { %s1717_s13 = smov (!%p160_p3, %s1184_s13), 1 }
   0xe   : > { %s1302_s14 = smul.u32 60, %s1717_s13  ;;  %s1190_s8 = sshll.u32 %s1717_s13, 3 }
   0xf   : > { %s168_s11 = scalar_lea.vmem %s1703_s3, %s1190_s8 }
  0x10   : > { %s1417_s17 = scalar_lea.vmem %s1702_s2, %s1302_s14 }
  0x11   : > { %v1420_v5 = vld.sshfl [vmem:[%s1417_s17 + $0x8] sm:$0x3 pattern:$0x76325410]  ;;  %v172_v49 = vld [vmem:[%s1417_s17] sm:$0x3] }
  0x12   : > { %418 = vrot.lane.b32.xlu1 %v1420_v5, %s1367_s18  ;;  %v1425_v6 = vld.sshfl [vmem:[%s1417_s17 + $0x4] sm:$0x3 pattern:$0x76325410]  ;;  %v1440_v13 = vcombine.low %v1420_v5, %v1420_v5  ;;  %174 = vst.msk [vmem:[#allocation2] sm:$0x3] %vm1704_vm1, %v172_v49 }
  0x13   : > { %285 = vrot.lane.b32.xlu0 %v1425_v6, %s1368_s19  ;;  %v314_v7 = vcombine.low %v1425_v6, %v1425_v6  ;;  %v1192_v8 = vld.sshfl [vmem:[%s1417_s17] sm:$0x3 pattern:$0x76325410] }
  0x14   : > { %v198_v10 = vcombine.low %v1192_v8, %v1192_v8  ;;  %v1330_v11 = vld [vmem:[%s1417_s17 + $0x26] ss:$0 sps:$4 sm:$0x33]   ;;  %v1331_v14 = vld [vmem:[%s1417_s17 + $0x22] ss:$0 sps:$4 sm:$0x33]  }
  0x15   : > { %v1332_v12 = vld [vmem:[%s1417_s17 + $0x6] ss:$0 sps:$4 sm:$0x33]   ;;  %248 = vst.msk [vmem:[#allocation2 + $0x8] sm:$0x30] %vm202_vm0, %v314_v7  ;;  %v432_v15 = vrot.slane %v1330_v11, %v1432_v9  ;;  %v299_v18 = vrot.slane %v1331_v14, %v1432_v9 }
  0x16   : > { %315 = vrot.lane.b32.xlu1 %v314_v7, %s1369_s20  ;;  %v330_v16 = vrot.slane %v1332_v12, %v1432_v9  ;;  %v1333_v17 = vld [vmem:[%s1417_s17 + $0xa] ss:$0 sps:$4 sm:$0x33]   ;;  %v1336_v24 = vld [vmem:[%s1417_s17 + $0xe] ss:$0 sps:$4 sm:$0x33]  }
  0x17   : > { %199 = vrot.lane.b32.xlu0 %v198_v10, %s1370_s21  ;;  %v463_v20 = vrot.slane %v1333_v17, %v1432_v9  ;;  %v1454_v21 = vld.sshfl [vmem:[%s1417_s17 + $0xc] sm:$0x3 pattern:$0x76325410]  ;;  %v596_v28 = vrot.slane %v1336_v24, %v1432_v9  ;;  %v1194_v58 = vld [vmem:[%s1417_s17 + $0x20] sm:$0x3] }
  0x18   : > { %v331_v19 = vcombine.low %v330_v16, %v330_v16  ;;  %v1334_v23 = vld [vmem:[%s1417_s17 + $0x2a] ss:$0 sps:$4 sm:$0x33]   ;;  %v1463_v25 = vcombine.low %v1454_v21, %v1454_v21  ;;  %v1335_v26 = vld [vmem:[%s1417_s17 + $0x2] ss:$0 sps:$4 sm:$0x33]  }
  0x19   : > { %v464_v22 = vcombine.low %v463_v20, %v463_v20  ;;  %v565_v27 = vrot.slane %v1334_v23, %v1432_v9  ;;  %v1337_v29 = vld [vmem:[%s1417_s17 + $0x2e] ss:$0 sps:$4 sm:$0x33]   ;;  %v231_v30 = vrot.slane %v1335_v26, %v1432_v9  ;;  %v1338_v31 = vld [vmem:[%s1417_s17 + $0x12] ss:$0 sps:$4 sm:$0x33]   ;;  %v597_v32 = vcombine.low %v596_v28, %v596_v28 }
  0x1a   : > { %448 = vrot.lane.b32.xlu1 %v1440_v13, %s1371_s22  ;;  %v698_v33 = vrot.slane %v1337_v29, %v1432_v9  ;;  %v1478_v34 = vld.sshfl [vmem:[%s1417_s17 + $0x10] sm:$0x3 pattern:$0x76325410]  ;;  %v729_v35 = vrot.slane %v1338_v31, %v1432_v9  ;;  %221 = vst.msk [vmem:[#allocation2 + $0x8] sm:$0x3] %vm1704_vm1, %v1194_v58 }
  0x1b   : > { %433 = vrot.lane.b32.xlu0 %v432_v15, %s1367_s18  ;;  %v1482_v36 = vld [vmem:[%s1417_s17 + $0x12] ss:$0 sps:$4 sm:$0x33]   ;;  %v1339_v38 = vld [vmem:[%s1417_s17 + $0x6] ss:$0 sps:$4 sm:$0x33]   ;;  %v1502_v45 = vcombine.low %v1478_v34, %v1478_v34 }
  0x1c   : > { %v1350_v37 = vld [vmem:[%s1417_s17 + $0x32] ss:$0 sps:$4 sm:$0x33]   ;;  %v759_v39 = vrot.slane %v1482_v36, %v1432_v9  ;;  %v1493_v41 = vld [vmem:[%s1417_s17 + $0x16] ss:$0 sps:$4 sm:$0x33]   ;;  %v730_v43 = vcombine.low %v729_v35, %v729_v35  ;;  %v360_v52 = vrot.slane %v1339_v38, %v1432_v9 }
  0x1d   : > { %v1490_v40 = vrot.slane %v1350_v37, %v1432_v9  ;;  %v1352_v42 = vld [vmem:[%s1417_s17 + $0x36] ss:$0 sps:$4 sm:$0x33]   ;;  %v1340_v44 = vld [vmem:[%s1417_s17 + $0x26] ss:$0 sps:$4 sm:$0x33]   ;;  %v892_v46 = vrot.slane %v1493_v41, %v1432_v9 }
  0x1e   : > { %300 = vrot.lane.b32.xlu1 %v299_v18, %s1368_s19  ;;  %v1507_v47 = vrot.slane %v1352_v42, %v1432_v9  ;;  %v1510_v48 = vld [vmem:[%s1417_s17 + $0x1a] ss:$0 sps:$4 sm:$0x33]   ;;  %v390_v54 = vrot.slane %v1340_v44, %v1432_v9  ;;  %v1355_v55 = vld [vmem:[%s1417_s17 + $0x2] ss:$0 sps:$4 sm:$0x33]  }
  0x1f   : > { %332 = vrot.lane.b32.xlu0 %v331_v19, %s1368_s19  ;;  %v1025_v50 = vrot.slane %v1510_v48, %v1432_v9  ;;  %v1354_v51 = vld [vmem:[%s1417_s17 + $0x3a] ss:$0 sps:$4 sm:$0x33]   ;;  %v1356_v57 = vld [vmem:[%s1417_s17 + $0x1e] ss:$0 sps:$4 sm:$0x33]   ;;  %v214_v59 = vrot.slane %v1355_v55, %v1432_v9  ;;  %v790_v35 = vcombine.low %v1490_v40, %v1490_v40 }
  0x20   : > { %v1208_v53 = vld.sshfl [vmem:[%s1417_s17 + $0x24] sm:$0x3 pattern:$0x76325410]  ;;  %v1525_v56 = vrot.slane %v1354_v51, %v1432_v9  ;;  %v185_v61 = vrot.slane %v1356_v57, %v1432_v9  ;;  %v391_v62 = vcombine.low %v390_v54, %v390_v54  ;;  %v1378_v23 = vmov 0.0  }
  0x21   : > { %v1357_v60 = vld [vmem:[%s1417_s17 + $0x22] ss:$0 sps:$4 sm:$0x33]   ;;  %v1341_v63 = vld [vmem:[%s1417_s17 + $0x32] ss:$0 sps:$4 sm:$0x33]   ;;  %v215_v1 = vcombine.low %v214_v59, %v214_v59  ;;  %1292 = vmatprep.subr.bf16.mxu0 %v1378_v23  ;;  %1298 = vmatprep.mubr.msk.bf16.mxu0 %vm1382_vm5, %v1378_v23 }
  0x22   : > { %551 = vrot.lane.b32.xlu1 %v1454_v21, %s1372_s23  ;;  %v1342_v0 = vld [vmem:[%s1417_s17 + $0x16] ss:$0 sps:$4 sm:$0x33]   ;;  %v259_v2 = vrot.slane %v1357_v60, %v1432_v9  ;;  %188 = vst.msk [vmem:[#allocation2] sm:$0xc] %vm187_vm2, %v185_v61  ;;  %v831_v4 = vrot.slane %v1341_v63, %v1432_v9  ;;  %v1056_v40 = vcombine.low %v1525_v56, %v1525_v56  ;;  %vm687_vm5 = vcmask 279776  }
  0x23   : > { %465 = vrot.lane.b32.xlu0 %v464_v22, %s1367_s18  ;;  %218 = vst.msk [vmem:[#allocation2] sm:$0xc0] %vm217_vm3, %v215_v1  ;;  %v862_v7 = vrot.slane %v1342_v0, %v1432_v9  ;;  %v1545_v8 = vld.sshfl [vmem:[%s1417_s17 + $0x14] sm:$0x3 pattern:$0x76325410] }
  0x24   : > { %v260_v3 = vcombine.low %v259_v2, %v259_v2  ;;  %v1343_v11 = vld [vmem:[%s1417_s17 + $0xa] ss:$0 sps:$4 sm:$0x33]   ;;  %v846_v14 = vcombine.low %v1545_v8, %v1545_v8  ;;  %v1345_v18 = vld [vmem:[%s1417_s17 + $0x36] ss:$0 sps:$4 sm:$0x33]  }
  0x25   : > { %v863_v10 = vcombine.low %v862_v7, %v862_v7  ;;  %v1344_v12 = vld [vmem:[%s1417_s17 + $0x2a] ss:$0 sps:$4 sm:$0x33]   ;;  %v1346_v19 = vld [vmem:[%s1417_s17 + $0x1a] ss:$0 sps:$4 sm:$0x33]   ;;  %v964_v20 = vrot.slane %v1345_v18, %v1432_v9 }
  0x26   : > { %581 = vrot.lane.b32.xlu1 %v1463_v25, %s1373_s24  ;;  %262 = vst.msk [vmem:[#allocation2 + $0x8] sm:$0xc0] %vm217_vm3, %v260_v3  ;;  %v523_v15 = vrot.slane %v1344_v12, %v1432_v9  ;;  %v1222_v16 = vld.sshfl [vmem:[%s1417_s17 + $0x28] sm:$0x3 pattern:$0x76325410]  ;;  %v995_v22 = vrot.slane %v1346_v19, %v1432_v9 }
  0x27   : > { %566 = vrot.lane.b32.xlu0 %v565_v27, %s1372_s23  ;;  %v1272_v24 = vld.sshfl [vmem:[%s1417_s17 + $0x18] sm:$0x3 pattern:$0x76325410]  ;;  %vm601_vm3 = vcmask 228526   ;;  %vm1707_vm1 = vcmask 285926  }
  0x28   : > { %v524_v17 = vcombine.low %v523_v15, %v523_v15  ;;  %v996_v26 = vcombine.low %v995_v22, %v995_v22  ;;  %v1347_v27 = vld [vmem:[%s1417_s17 + $0xe] ss:$0 sps:$4 sm:$0x33]   ;;  %v979_v29 = vcombine.low %v1272_v24, %v1272_v24 }
  0x29   : > { %v1348_v28 = vld [vmem:[%s1417_s17 + $0x2e] ss:$0 sps:$4 sm:$0x33]  }
  0x2a   : > { %232 = vrot.lane.b32.xlu1 %v231_v30, %s1370_s21  ;;  %v626_v30 = vrot.slane %v1347_v27, %v1432_v9  ;;  %v1236_v31 = vld.sshfl [vmem:[%s1417_s17 + $0x2c] sm:$0x3 pattern:$0x76325410] }
  0x2b   : > { %598 = vrot.lane.b32.xlu0 %v597_v32, %s1372_s23  ;;  %v1264_v37 = vld.sshfl [vmem:[%s1417_s17 + $0x34] sm:$0x3 pattern:$0x76325410] }
  0x2c   : > { %v1278_v36 = vld.sshfl [vmem:[%s1417_s17 + $0x38] sm:$0x3 pattern:$0x76325410] }
  0x2d   : > { %v1281_v38 = vld.sshfl [vmem:[%s1417_s17 + $0x1c] sm:$0x3 pattern:$0x76325410] }
  0x2e   : > { %699 = vrot.lane.b32.xlu1 %v698_v33, %s1374_s25  ;;  %v1250_v33 = vld.sshfl [vmem:[%s1417_s17 + $0x30] sm:$0x3 pattern:$0x76325410] }
  0x2f   : > { %684 = vrot.lane.b32.xlu0 %v1478_v34, %s1374_s25 }
  0x32   : > { %731 = vrot.lane.b32.xlu1 %v730_v43, %s1374_s25 }
  0x33   : > { %714 = vrot.lane.b32.xlu0 %v1502_v45, %s1375_s26 }
  0x36   : > { %361 = vrot.lane.b32.xlu1 %v360_v52, %s1369_s20 }
  0x37   : > { %347 = vrot.lane.b32.xlu0 %v1208_v53, %s1368_s19 }
  0x3a   : > { %392 = vrot.lane.b32.xlu1 %v391_v62, %s1368_s19 }
  0x3b   : > { %376 = vrot.lane.b32.xlu0 %v1440_v13, %s1368_s19  ;;  %v493_v13 = vrot.slane %v1343_v11, %v1432_v9 }
  0x3e   : > { %832 = vrot.lane.b32.xlu1 %v831_v4, %s1376_s27 }
  0x3f   : > { %817 = vrot.lane.b32.xlu0 %v1545_v8, %s1376_s27 }
  0x42   : > { %864 = vrot.lane.b32.xlu1 %v863_v10, %s1376_s27 }
  0x43   : > { %847 = vrot.lane.b32.xlu0 %v846_v14, %s1377_s28 }
  0x46   : > { %494 = vrot.lane.b32.xlu1 %v493_v13, %s1371_s22 }
  0x47   : > { %480 = vrot.lane.b32.xlu0 %v1222_v16, %s1367_s18 }
  0x4a   : > { %525 = vrot.lane.b32.xlu1 %v524_v17, %s1367_s18 }
  0x4b   : > { %509 = vrot.lane.b32.xlu0 %v1463_v25, %s1367_s18  ;;  %v656_v25 = vrot.slane %v1348_v28, %v1432_v9  ;;  %v1078_v9 = vld [vmem:[%s1701_s1] sm:$0xff] }
  0x4d   : > { %v657_v32 = vcombine.low %v656_v25, %v656_v25 }
  0x4e   : > { %965 = vrot.lane.b32.xlu1 %v964_v20, %s1379_s29 }
  0x4f   : > { %950 = vrot.lane.b32.xlu0 %v1272_v24, %s1379_s29 }
  0x52   : > { %997 = vrot.lane.b32.xlu1 %v996_v26, %s1379_s29 }
  0x53   : > { %980 = vrot.lane.b32.xlu0 %v979_v29, %s1380_s30 }
  0x56   : > { %627 = vrot.lane.b32.xlu1 %v626_v30, %s1373_s24 }
  0x57   : > { %613 = vrot.lane.b32.xlu0 %v1236_v31, %s1372_s23 }
  0x5a   : > { %658 = vrot.lane.b32.xlu1 %v657_v32, %s1372_s23 }
  0x5b   : > { %642 = vrot.lane.b32.xlu0 %v1502_v45, %s1372_s23 }
  0x5e   : > { %746 = vrot.lane.b32.xlu1 %v1250_v33, %s1374_s25 }
  0x5f   : > { %272 = vrot.lane.b32.xlu0 %v1425_v6, %s1370_s21  ;;  %v923_v6 = vcombine.low %v1507_v47, %v1507_v47 }
  0x62   : > { %775 = vrot.lane.b32.xlu1 %v846_v14, %s1374_s25 }
  0x63   : > { %760 = vrot.lane.b32.xlu0 %v759_v39, %s1375_s26  ;;  %v1381_v39 = vmov 0  }
  0x64   : > { %171 = vst.msk [vmem:[#allocation2 + $0x10] sm:$0xfc] %vm170_vm4, %v1381_v39  ;;  %1329 = vset.pattern.permute.xlu0 %v1381_v39  ;;  %1328 = vset.pattern.permute.xlu1 %v1381_v39  ;;  %vm1706_vm4 = vcmask 281826   ;;  %v1074_v39 = vld [vmem:[%s1700_s0] sm:$0xf] }
  0x66   : > { %405 = vrot.lane.b32.xlu1 %v1420_v5, %s1369_s20  ;;  %v1040_v5 = vcombine.low %v1281_v38, %v1281_v38 }
  0x67   : > { %791 = vrot.lane.b32.xlu0 %v790_v35, %s1374_s25 }
  0x6a   : > { %893 = vrot.lane.b32.xlu1 %v892_v46, %s1377_s28 }
  0x6b   : > { %879 = vrot.lane.b32.xlu0 %v1264_v37, %s1376_s27 }
  0x6e   : > { %924 = vrot.lane.b32.xlu1 %v923_v6, %s1376_s27 }
  0x6f   : > { %908 = vrot.lane.b32.xlu0 %v979_v29, %s1376_s27 }
  0x72   : > { %1012 = vrot.lane.b32.xlu1 %v1278_v36, %s1379_s29 }
  0x73   : > { %538 = vrot.lane.b32.xlu0 %v1454_v21, %s1371_s22 }
  0x76   : > { %1041 = vrot.lane.b32.xlu1 %v1040_v5, %s1379_s29 }
  0x77   : > { %1026 = vrot.lane.b32.xlu0 %v1025_v50, %s1380_s30 }
  0x7a   : > { %671 = vrot.lane.b32.xlu1 %v1478_v34, %s1373_s24 }
  0x7b   : > { %1057 = vrot.lane.b32.xlu0 %v1056_v40, %s1379_s29 }
  0x7e   : > { %937 = vrot.lane.b32.xlu1 %v1272_v24, %s1377_s28 }
  0x7f   : > { %804 = vrot.lane.b32.xlu0 %v1545_v8, %s1375_s26 }
  0x82   : > { %1081 = vperm.xlu1 %1328, %v1078_v9  }
  0x83   : > { %1070 = vrot.lane.b32.xlu0 %v1281_v38, %s1380_s30 }
  0x84   : > { %v419_v21 = vpop.permute.xlu1 %418 }
  0x85   : > { %v286_v34 = vpop.permute.xlu0 %285 }
  0x86   : > { %289 = vst.msk [vmem:[#allocation2] sm:$0x3] %vm288_vm6, %v286_v34 }
  0x87   : > { %422 = vst.msk [vmem:[#allocation2] sm:$0x3] %vm421_vm7, %v419_v21 }
  0x88   : > { %v316_v41 = vpop.permute.xlu1 %315 }
  0x89   : > { %v200_v42 = vpop.permute.xlu0 %199 }
  0x8a   : > { %203 = vst.msk [vmem:[#allocation2] sm:$0x30] %vm202_vm0, %v200_v42  ;;  %vm569_vm0 = vcmask 224426  }
  0x8b   : > { %319 = vst.msk [vmem:[#allocation2] sm:$0x30] %vm318_vm8, %v316_v41 }
  0x8c   : > { %v449_v43 = vpop.permute.xlu1 %448 }
  0x8d   : > { %452 = vst.msk [vmem:[#allocation2] sm:$0x30] %vm451_vm9, %v449_v43  ;;  %v434_v44 = vpop.permute.xlu0 %433 }
  0x90   : > { %v301_v45 = vpop.permute.xlu1 %300 }
  0x91   : > { %v333_v46 = vpop.permute.xlu0 %332  ;;  %304 = vst.msk [vmem:[#allocation2] sm:$0xc] %vm303_vm10, %v301_v45 }
  0x92   : > { %336 = vst.msk [vmem:[#allocation2] sm:$0xc0] %vm335_vm11, %v333_v46 }
  0x93   : > { %437 = vst.msk [vmem:[#allocation2] sm:$0xc] %vm436_vm12, %v434_v44 }
  0x94   : > { %v552_v47 = vpop.permute.xlu1 %551 }
  0x95   : > { %555 = vst.msk [vmem:[#allocation2] sm:$0x3] %vm554_vm13, %v552_v47  ;;  %v466_v48 = vpop.permute.xlu0 %465 }
  0x96   : > { %469 = vst.msk [vmem:[#allocation2] sm:$0xc0] %vm468_vm14, %v466_v48 }
  0x98   : > { %v582_v49 = vpop.permute.xlu1 %581 }
  0x99   : > { %585 = vst.msk [vmem:[#allocation2] sm:$0x30] %vm1705_vm15, %v582_v49  ;;  %v567_v50 = vpop.permute.xlu0 %566  ;;  %vm1708_vm15 = vcmask 283876  }
  0x9a   : > { %570 = vst.msk [vmem:[#allocation2] sm:$0xc] %vm569_vm0, %v567_v50 }
  0x9c   : > { %v233_v51 = vpop.permute.xlu1 %232 }
  0x9d   : > { %235 = vst.msk [vmem:[#allocation2 + $0x8] sm:$0xc] %vm187_vm2, %v233_v51  ;;  %v599_v52 = vpop.permute.xlu0 %598  ;;  %vm835_vm2 = vcmask 339226  }
  0x9e   : > { %602 = vst.msk [vmem:[#allocation2] sm:$0xc0] %vm601_vm3, %v599_v52 }
  0xa0   : > { %v700_v53 = vpop.permute.xlu1 %699 }
  0xa1   : > { %703 = vst.msk [vmem:[#allocation2] sm:$0xc] %vm1706_vm4, %v700_v53  ;;  %v685_v54 = vpop.permute.xlu0 %684  ;;  %vm820_vm4 = vcmask 337176  }
  0xa2   : > { %688 = vst.msk [vmem:[#allocation2] sm:$0x3] %vm687_vm5, %v685_v54 }
  0xa4   : > { %v732_v55 = vpop.permute.xlu1 %731 }
  0xa5   : > { %735 = vst.msk [vmem:[#allocation2] sm:$0xc0] %vm1707_vm1, %v732_v55  ;;  %v715_v56 = vpop.permute.xlu0 %714  ;;  %vm867_vm1 = vcmask 343326  }
  0xa6   : > { %718 = vst.msk [vmem:[#allocation2] sm:$0x30] %vm1708_vm15, %v715_v56  ;;  %vm1709_vm15 = vcmask 341276  }
  0xa8   : > { %v362_v57 = vpop.permute.xlu1 %361 }
  0xa9   : > { %364 = vst.msk [vmem:[#allocation2 + $0x8] sm:$0xc] %vm303_vm10, %v362_v57  ;;  %v348_v58 = vpop.permute.xlu0 %347  ;;  %vm953_vm10 = vcmask 394576  }
  0xaa   : > { %350 = vst.msk [vmem:[#allocation2 + $0x8] sm:$0x3] %vm288_vm6, %v348_v58 }
  0xac   : > { %v393_v59 = vpop.permute.xlu1 %392 }
  0xad   : > { %395 = vst.msk [vmem:[#allocation2 + $0x8] sm:$0xc0] %vm335_vm11, %v393_v59  ;;  %v377_v60 = vpop.permute.xlu0 %376  ;;  %vm1000_vm11 = vcmask 400726  }
  0xae   : > { %379 = vst.msk [vmem:[#allocation2 + $0x8] sm:$0x30] %vm318_vm8, %v377_v60  ;;  %vm968_vm8 = vcmask 396626  }
  0xb0   : > { %v833_v61 = vpop.permute.xlu1 %832 }
  0xb1   : > { %836 = vst.msk [vmem:[#allocation2] sm:$0xc] %vm835_vm2, %v833_v61  ;;  %v818_v62 = vpop.permute.xlu0 %817 }
  0xb2   : > { %821 = vst.msk [vmem:[#allocation2] sm:$0x3] %vm820_vm4, %v818_v62 }
  0xb4   : > { %v865_v63 = vpop.permute.xlu1 %864 }
  0xb5   : > { %868 = vst.msk [vmem:[#allocation2] sm:$0xc0] %vm867_vm1, %v865_v63  ;;  %v848_v0 = vpop.permute.xlu0 %847 }
  0xb6   : > { %851 = vst.msk [vmem:[#allocation2] sm:$0x30] %vm1709_vm15, %v848_v0  ;;  %vm983_vm15 = vcmask 398676  }
  0xb8   : > { %v495_v1 = vpop.permute.xlu1 %494 }
  0xb9   : > { %497 = vst.msk [vmem:[#allocation2 + $0x8] sm:$0xc] %vm436_vm12, %v495_v1  ;;  %v481_v2 = vpop.permute.xlu0 %480  ;;  %vm1711_vm12 = vcmask 50176  }
  0xba   : > { %483 = vst.msk [vmem:[#allocation2 + $0x8] sm:$0x3] %vm421_vm7, %v481_v2 }
  0xbc   : > { %v526_v3 = vpop.permute.xlu1 %525 }
  0xbd   : > { %528 = vst.msk [vmem:[#allocation2 + $0x8] sm:$0xc0] %vm468_vm14, %v526_v3  ;;  %v510_v4 = vpop.permute.xlu0 %509  ;;  %vm1712_vm14 = vcmask 283876  }
  0xbe   : > { %512 = vst.msk [vmem:[#allocation2 + $0x8] sm:$0x30] %vm451_vm9, %v510_v4  ;;  %vm1710_vm9 = vcmask 226476  }
  0xc0   : > { %v966_v7 = vpop.permute.xlu1 %965 }
  0xc1   : > { %969 = vst.msk [vmem:[#allocation2] sm:$0xc] %vm968_vm8, %v966_v7  ;;  %v951_v8 = vpop.permute.xlu0 %950 }
  0xc2   : > { %954 = vst.msk [vmem:[#allocation2] sm:$0x3] %vm953_vm10, %v951_v8 }
  0xc4   : > { %v998_v10 = vpop.permute.xlu1 %997 }
  0xc5   : > { %1001 = vst.msk [vmem:[#allocation2] sm:$0xc0] %vm1000_vm11, %v998_v10  ;;  %v981_v11 = vpop.permute.xlu0 %980 }
  0xc6   : > { %984 = vst.msk [vmem:[#allocation2] sm:$0x30] %vm983_vm15, %v981_v11 }
  0xc8   : > { %v628_v12 = vpop.permute.xlu1 %627 }
  0xc9   : > { %v614_v14 = vpop.permute.xlu0 %613  ;;  %630 = vst.msk [vmem:[#allocation2 + $0x8] sm:$0xc] %vm569_vm0, %v628_v12  ;;  %vm1713_vm0 = vcmask 281826  }
  0xca   : > { %616 = vst.msk [vmem:[#allocation2 + $0x8] sm:$0x3] %vm554_vm13, %v614_v14 }
  0xcc   : > { %v659_v13 = vpop.permute.xlu1 %658 }
  0xcd   : > { %v643_v15 = vpop.permute.xlu0 %642  ;;  %v1075_v16 = vld [vmem:[#allocation2] sm:$0xff]  ;;  %661 = vst.msk [vmem:[#allocation2 + $0x8] sm:$0xc0] %vm601_vm3, %v659_v13  ;;  %vm1714_vm3 = vcmask 285926  }
  0xce   : > { %645 = vst.msk [vmem:[#allocation2 + $0x8] sm:$0x30] %vm1710_vm9, %v643_v15  ;;  %1293 = vmatpush3.bf16.msra.mxu0 %v1075_v16  ;;  %vm1715_vm9 = vcmask 341276  }
  0xcf   : > { %1294 = vmatprep.subr.bf16.mxu0 %v1378_v23 }
  0xd0   : > { %v747_v17 = vpop.permute.xlu1 %746 }
  0xd1   : > { %v273_v18 = vpop.permute.xlu0 %272  ;;  %749 = vst.msk [vmem:[#allocation2 + $0x8] sm:$0x3] %vm687_vm5, %v747_v17 }
  0xd2   : > { %275 = vst.msk [vmem:[#allocation2 + $0x10] sm:$0x3] %vm1711_vm12, %v273_v18 }
  0xd4   : > { %v776_v19 = vpop.permute.xlu1 %775 }
  0xd5   : > { %v761_v20 = vpop.permute.xlu0 %760  ;;  %778 = vst.msk [vmem:[#allocation2 + $0x8] sm:$0x30] %vm1712_vm14, %v776_v19 }
  0xd6   : > { %763 = vst.msk [vmem:[#allocation2 + $0x8] sm:$0xc] %vm1713_vm0, %v761_v20 }
  0xd8   : > { %v406_v22 = vpop.permute.xlu1 %405 }
  0xd9   : > { %v792_v24 = vpop.permute.xlu0 %791  ;;  %408 = vst.msk [vmem:[#allocation2 + $0x10] sm:$0x3] %vm288_vm6, %v406_v22  ;;  %vm1129_vm6 = vcmask 400384  }
  0xda   : > { %794 = vst.msk [vmem:[#allocation2 + $0x8] sm:$0xc0] %vm1714_vm3, %v792_v24 }
  0xdc   : > { %v894_v26 = vpop.permute.xlu1 %893 }
  0xdd   : > { %v880_v27 = vpop.permute.xlu0 %879  ;;  %896 = vst.msk [vmem:[#allocation2 + $0x8] sm:$0xc] %vm835_vm2, %v894_v26 }
  0xde   : > { %882 = vst.msk [vmem:[#allocation2 + $0x8] sm:$0x3] %vm820_vm4, %v880_v27 }
  0xe0   : > { %v925_v28 = vpop.permute.xlu1 %924 }
  0xe1   : > { %v909_v29 = vpop.permute.xlu0 %908  ;;  %927 = vst.msk [vmem:[#allocation2 + $0x8] sm:$0xc0] %vm867_vm1, %v925_v28  ;;  %vm1084_vm1 = vcmask 392192  }
  0xe2   : > { %911 = vst.msk [vmem:[#allocation2 + $0x8] sm:$0x30] %vm1715_vm9, %v909_v29 }
  0xe4   : > { %v1013_v30 = vpop.permute.xlu1 %1012 }
  0xe5   : > { %v539_v25 = vpop.permute.xlu0 %538  ;;  %1015 = vst.msk [vmem:[#allocation2 + $0x8] sm:$0x3] %vm953_vm10, %v1013_v30 }
  0xe6   : > { %541 = vst.msk [vmem:[#allocation2 + $0x10] sm:$0x3] %vm421_vm7, %v539_v25 }
  0xe8   : > { %v1042_v31 = vpop.permute.xlu1 %1041 }
  0xe9   : > { %v1027_v32 = vpop.permute.xlu0 %1026  ;;  %1044 = vst.msk [vmem:[#allocation2 + $0x8] sm:$0x30] %vm983_vm15, %v1042_v31 }
  0xea   : > { %1029 = vst.msk [vmem:[#allocation2 + $0x8] sm:$0xc] %vm968_vm8, %v1027_v32 }
  0xec   : > { %v672_v33 = vpop.permute.xlu1 %671 }
  0xed   : > { %v1058_v35 = vpop.permute.xlu0 %1057  ;;  %674 = vst.msk [vmem:[#allocation2 + $0x10] sm:$0x3] %vm554_vm13, %v672_v33 }
  0xee   : > { %1060 = vst.msk [vmem:[#allocation2 + $0x8] sm:$0xc0] %vm1000_vm11, %v1058_v35 }
  0xf0   : > { %v938_v37 = vpop.permute.xlu1 %937 }
  0xf1   : > { %v805_v6 = vpop.permute.xlu0 %804 }
  0xf2   : > { %807 = vst.msk [vmem:[#allocation2 + $0x10] sm:$0x3] %vm687_vm5, %v805_v6 }
  0xf3   : > { %940 = vst.msk [vmem:[#allocation2 + $0x10] sm:$0x3] %vm820_vm4, %v938_v37 }
  0xf5   : > { %v1071_v36 = vpop.permute.xlu0 %1070  ;;  %v1076_v38 = vld [vmem:[#allocation2 + $0x8] sm:$0xff] }
  0xf6   : > { %1073 = vst.msk [vmem:[#allocation2 + $0x10] sm:$0x3] %vm953_vm10, %v1071_v36  ;;  %1295 = vmatpush3.bf16.msra.mxu0 %v1076_v38 }
  0xf7   : > { %1296 = vmatprep.subr.bf16.mxu0 %v1378_v23 }
  0xfd   : > { %v1077_v5 = vld [vmem:[#allocation2 + $0x10] sm:$0xff] }
  0xfe   : > { %1297 = vmatpush3.bf16.msra.mxu0 %v1077_v5 }
 0x101   : > { %1299 = vmatmul.mubr.msk.bf16.vlgmr.msra.gmra.mrb[0].mxu0 %vm1084_vm1, %v1074_v39  ;;  %v1082_v40 = vpop.permute.xlu1 %1081 }
 0x1d4   : > { %v1122_v9 = vpop.f32.mrb[0].mxu0 }
 0x1d5   : > { %v1123_v21 = vadd.f32 %v1122_v9, %v1082_v40  ;;  %v1300_v34 = vpop.f32.mrb[1].mxu0 }
 0x1d6   : > { %v1125_v41 = vpop.f32.mrb[2].mxu0 }
 0x1d7   : > { %v1128_v23 = vmax.f32 %v1123_v21, 0.0  ;;  %v1301_v42 = vpop.f32.mrb[3].mxu0 }
 0x1d9   : > { %1130 = vst.msk [vmem:[%s168_s11] sm:$0xff] %vm1129_vm6, %v1128_v23 }
 0x1da PF: > { %s13_s12 = sadd.s32 1, %s1364_s12  }
 0x1db   : > { %p10_p4 = scmp.ge.s32.totalorder %s13_s12, 4  }
 0x1dd   :  { %12 = sbr.rel (!%p10_p4) target bundleno = 1 (0x1), region = 91 }

</bundles_post_ra>
